<compile_context>
chip_gen: v5e
topology: v5e:2x2
jax: 0.10.0
libtpu: 0.0.40
codegen_flags: <defaults>
</compile_context>

<pallas_src>
import jax
import jax.numpy as jnp
from jax.experimental import pallas as pl
from jax.experimental.pallas import tpu as pltpu


# ----------------------------------------------------------------------------
# Kernel
# ----------------------------------------------------------------------------
def _patch_embed_kernel(x_ref, w_ref, b_ref, o_ref):
    # x_ref: (1, TL, K)  patch vectors for the current (batch, L-tile)
    # w_ref: (K, D)      flattened conv weight, already transposed to [in, out]
    # b_ref: (1, D)      bias
    # o_ref: (1, TL, D)
    out = jnp.dot(x_ref[0], w_ref[...], preferred_element_type=jnp.float32)
    out = out + b_ref[...].astype(jnp.float32)          # (1, D) broadcasts
    o_ref[0] = out.astype(o_ref.dtype)


# ----------------------------------------------------------------------------
# Parameter prep (off the hot path)
# ----------------------------------------------------------------------------
def prepare_conv3d_weight(weight, dtype=None):
    """One-time prep: Conv3d weight [D, C, pt, ph, pw] -> [K, D], K=C*pt*ph*pw.

    Call at parameter-load time so no transpose sits on the forward path.
    Pass dtype=jnp.bfloat16 for the reduced-bandwidth bf16 path (the matmul
    still accumulates in fp32 inside the kernel).
    """
    D = weight.shape[0]
    w = weight.reshape(D, -1).T
    if dtype is not None:
        w = w.astype(dtype)
    return w


# ----------------------------------------------------------------------------
# Tiling / VMEM heuristics
# ----------------------------------------------------------------------------
def _round_up(x, m):
    return (x + m - 1) // m * m


def _sublane_multiple(itemsize):
    # Sub-32-bit dtypes pack along sublanes: 8 rows/vreg for 32-bit,
    # 16 for 16-bit, 32 for 8-bit.
    return 8 * max(1, 4 // max(itemsize, 1))


def _default_vmem_budget_and_limit():
    """Generation-aware (budget, vmem_limit) in bytes."""
    try:
        cap = getattr(pltpu.get_tpu_info(), "vmem_capacity_bytes", None)
    except Exception:
        cap = None
    if cap is not None and cap >= 100 * 1024 * 1024:
        # v5e / v6e: 128 MiB physical VMEM per TensorCore.
        return 64 * 1024 * 1024, 100 * 1024 * 1024
    # v7x (64 MiB per TC) or unknown: stay conservative, keep scoped <= ~48 MiB.
    return 40 * 1024 * 1024, 48 * 1024 * 1024


def _choose_l_tile(L, K, D, in_itemsize, w_itemsize, out_itemsize, budget_bytes):
    """Largest L-tile (multiple of 8) whose padding-aware, double-buffered
    working set fits the VMEM budget. L is later padded up to a multiple of
    the returned tile, so the tile does not need to divide L exactly."""
    Kp = _round_up(K, 128)                              # lane padding of K
    Dp = _round_up(D, 128)                              # lane padding of D
    Kw = _round_up(K, _sublane_multiple(w_itemsize))    # sublane padding of K
    l_cap = _round_up(L, 8)                             # avoid gross over-padding
    for tl in (2048, 1024, 512, 256, 128, 64, 32, 16, 8):
        if tl > l_cap:
            continue
        tin = _round_up(tl, _sublane_multiple(in_itemsize))
        tout = _round_up(tl, _sublane_multiple(out_itemsize))
        est = (2 * tin * Kp * in_itemsize        # double-buffered input tile
               + 2 * tout * Dp * out_itemsize    # double-buffered output tile
               + 2 * Kw * Dp * w_itemsize        # weight (counted x2: conservative
               + 2 * 8 * Dp * 4                  #   in case Buffered(1) is unavailable)
               + _round_up(tl, 8) * Dp * 4)      # fp32 matmul result before the cast
        if est <= budget_bytes:
            return tl
    return 8


def _make_specs(K, D, tl, single_buffer_consts):
    # Weight/bias index maps are constant across the grid; request a single
    # buffer for them (no second copy needed) when supported.
    const_kw = {"pipeline_mode": pl.Buffered(1)} if single_buffer_consts else {}
    in_specs = [
        pl.BlockSpec((1, tl, K), lambda b, l: (b, l, 0)),            # patches
        pl.BlockSpec((K, D), lambda b, l: (0, 0), **const_kw),       # weight^T
        pl.BlockSpec((1, D), lambda b, l: (0, 0), **const_kw),       # bias
    ]
    out_spec = pl.BlockSpec((1, tl, D), lambda b, l: (b, l, 0))
    return in_specs, out_spec


# ----------------------------------------------------------------------------
# Forward
# ----------------------------------------------------------------------------
def patch_embedding_forward(x, w_flat_t, bias, patch_size=(1, 2, 2), *,
                            out_dtype=None,
                            vmem_budget_bytes=None,
                            vmem_limit_bytes=None):
    """Pallas implementation of PatchEmbedding.forward.

    x:        [B, C, T, H, W]  video latents
    w_flat_t: [K, D]           from prepare_conv3d_weight(conv_weight)
    bias:     [D]
    returns   [B, L, D],  L = (T/pt)*(H/ph)*(W/pw), dtype = w_flat_t.dtype
              unless out_dtype is given.
    """
    pt, ph, pw = patch_size
    B, C, T, H, W = x.shape
    K, D = w_flat_t.shape
    assert K == C * pt * ph * pw, (K, C, patch_size)
    assert T % pt == 0 and H % ph == 0 and W % pw == 0
    Tp, Hp, Wp = T // pt, H // ph, W // pw
    L = Tp * Hp * Wp

    compute_dtype = w_flat_t.dtype
    if out_dtype is None:
        out_dtype = compute_dtype

    if vmem_budget_bytes is None or vmem_limit_bytes is None:
        auto_budget, auto_limit = _default_vmem_budget_and_limit()
        if vmem_budget_bytes is None:
            vmem_budget_bytes = auto_budget
        if vmem_limit_bytes is None:
            vmem_limit_bytes = auto_limit

    # im2col (layout plumbing, not compute):
    #   [B, C, T, H, W] -> [B, L, K]
    # K ordered (c, kt, kh, kw) to match the conv-weight flattening,
    # L ordered (t, h, w) row-major to match flatten(2).transpose(1, 2).
    # allow_input_fusion below lets XLA fuse this into the pallas operand.
    xp = x.reshape(B, C, Tp, pt, Hp, ph, Wp, pw)
    xp = xp.transpose(0, 2, 4, 6, 1, 3, 5, 7)        # [B,Tp,Hp,Wp,C,pt,ph,pw]
    xp = xp.reshape(B, L, K).astype(compute_dtype)

    b2 = bias.reshape(1, D)

    tl = _choose_l_tile(L, K, D,
                        jnp.dtype(compute_dtype).itemsize,
                        jnp.dtype(w_flat_t.dtype).itemsize,
                        jnp.dtype(out_dtype).itemsize,
                        vmem_budget_bytes)
    num_l = pl.cdiv(L, tl)
    # v7x has 2 TensorCores: keep the total program count even so both get work.
    while (B * num_l) % 2 == 1 and tl > 8:
        tl //= 2
        num_l = pl.cdiv(L, tl)

    # Pad L up to a multiple of the tile (no full-L fallback, ever).
    Lpad = num_l * tl
    if Lpad != L:
        xp = jnp.pad(xp, ((0, 0), (0, Lpad - L), (0, 0)))

    grid = (B, num_l)

    def _run(single_buffer_consts, input_fusion):
        in_specs, out_spec = _make_specs(K, D, tl, single_buffer_consts)
        params = dict(
            dimension_semantics=("parallel", "parallel"),
            vmem_limit_bytes=vmem_limit_bytes,
        )
        if input_fusion:
            # Fuse only the patch operand (index 0): lets XLA feed the im2col
            # transpose straight into the kernel's operand instead of a
            # separate HBM round trip.
            params["allow_input_fusion"] = [True, False, False]
        return pl.pallas_call(
            _patch_embed_kernel,
            out_shape=jax.ShapeDtypeStruct((B, Lpad, D), out_dtype),
            grid=grid,
            in_specs=in_specs,
            out_specs=out_spec,
            compiler_params=pltpu.CompilerParams(**params),
        )(xp, w_flat_t, b2)

    # Graceful degradation: the fallbacks only drop optional perf hints
    # (single-buffered constants, operand fusion), never change semantics.
    last_err = None
    out = None
    for cfg in ((True, True), (False, True), (False, False)):
        try:
            out = _run(*cfg)
            break
        except Exception as e:   # noqa: BLE001 - hint unsupported on this build
            last_err = e
    if out is None:
        raise last_err

    if Lpad != L:
        out = out[:, :L, :]
    return out


# ----------------------------------------------------------------------------
# Pure-JAX reference (mirrors the PyTorch forward: Conv3d + flatten + transpose)
# ----------------------------------------------------------------------------
def patch_embedding_ref(x, weight, bias, patch_size=(1, 2, 2)):
    out = jax.lax.conv_general_dilated(
        x, weight, window_strides=patch_size, padding="VALID",
        dimension_numbers=("NCDHW", "OIDHW", "NCDHW"))
    B, D = out.shape[:2]
    out = out + bias.reshape(1, D, 1, 1, 1)
    return out.reshape(B, D, -1).transpose(0, 2, 1)


if __name__ == "__main__":
    # Small shapes consistent with the module: in_channels=4 (latent-ish),
    # embed_dim=32, patch_size=(1,2,2), video latents [B, C, T, H, W].
    B, C, T, H, W = 2, 4, 8, 16, 16
    embed_dim = 32
    patch_size = (1, 2, 2)
    K = C * patch_size[0] * patch_size[1] * patch_size[2]
    L = (T // patch_size[0]) * (H // patch_size[1]) * (W // patch_size[2])

    key = jax.random.PRNGKey(0)
    k_x, k_w, k_b = jax.random.split(key, 3)

    x = jax.random.normal(k_x, (B, C, T, H, W), dtype=jnp.float32)

    # PyTorch-style Conv3d default init: uniform(-1/sqrt(fan_in), 1/sqrt(fan_in))
    bound = 1.0 / (K ** 0.5)
    conv_weight = jax.random.uniform(k_w, (embed_dim, C) + patch_size,
                                     jnp.float32, minval=-bound, maxval=bound)
    conv_bias = jax.random.uniform(k_b, (embed_dim,), jnp.float32,
                                   minval=-bound, maxval=bound)

    ref = patch_embedding_ref(x, conv_weight, conv_bias, patch_size)

    # --- fp32 path --------------------------------------------------------
    w_flat_t = prepare_conv3d_weight(conv_weight)        # one-time, off hot path
    out = patch_embedding_forward(x, w_flat_t, conv_bias, patch_size)
    out = jax.block_until_ready(out)
    assert out.shape == (B, L, embed_dim), out.shape
    assert jnp.allclose(out, ref, rtol=1e-3, atol=1e-3), \
        float(jnp.max(jnp.abs(out - ref)))

    # --- bf16 path (halved HBM traffic; fp32 accumulation inside) ----------
    w_bf16 = prepare_conv3d_weight(conv_weight, dtype=jnp.bfloat16)
    out_bf16 = patch_embedding_forward(x, w_bf16, conv_bias, patch_size)
    out_bf16 = jax.block_until_ready(out_bf16)
    assert out_bf16.shape == (B, L, embed_dim), out_bf16.shape
    assert out_bf16.dtype == jnp.bfloat16, out_bf16.dtype
    assert jnp.allclose(out_bf16.astype(jnp.float32), ref, rtol=0.08, atol=0.08), \
        float(jnp.max(jnp.abs(out_bf16.astype(jnp.float32) - ref)))

    print("KERNEL_OK")
</pallas_src>

<mosaic_0001>
module attributes {stable_mosaic.version = 11 : i64} {
  func.func @_patch_embed_kernel(%arg0: i32, %arg1: i32, %arg2: memref<1x512x16xf32, #tpu.memory_space<vmem>>, %arg3: memref<16x32xf32, #tpu.memory_space<vmem>>, %arg4: memref<1x32xf32, #tpu.memory_space<vmem>>, %arg5: memref<1x512x32xf32, #tpu.memory_space<vmem>>) attributes {dimension_semantics = [#tpu.dimension_semantics<parallel>, #tpu.dimension_semantics<parallel>], iteration_bounds = array<i64: 2, 1>, scalar_prefetch = 0 : i64, scratch_operands = 0 : i64, tpu.core_type = #tpu.core_type<tc>, window_params = [{transform_indices = @transform_0, window_bounds = array<i64: 1, 512, 16>}, {pipeline_mode = #tpu.pipeline_mode<synchronous>, transform_indices = @transform_1, window_bounds = array<i64: 16, 32>}, {pipeline_mode = #tpu.pipeline_mode<synchronous>, transform_indices = @transform_2, window_bounds = array<i64: 1, 32>}, {transform_indices = @transform_3, window_bounds = array<i64: 1, 512, 32>}]} {
    %c0 = arith.constant 0 : index
    %c0_0 = arith.constant 0 : index
    %c0_1 = arith.constant 0 : index
    %0 = vector.load %arg2[%c0, %c0_0, %c0_1] : memref<1x512x16xf32, #tpu.memory_space<vmem>>, vector<1x512x16xf32>
    %1 = vector.shape_cast %0 : vector<1x512x16xf32> to vector<512x16xf32>
    %c0_2 = arith.constant 0 : index
    %c0_3 = arith.constant 0 : index
    %2 = vector.load %arg3[%c0_2, %c0_3] : memref<16x32xf32, #tpu.memory_space<vmem>>, vector<16x32xf32>
    %cst = arith.constant dense<0.000000e+00> : vector<512x32xf32>
    %3 = tpu.matmul %1, %2, %cst {dimension_numbers = #tpu.dot_dimension_numbers<[1], [0], [0], [1], [0, 0, 1, 1], [], []>} : vector<512x16xf32>, vector<16x32xf32>, vector<512x32xf32> -> vector<512x32xf32>
    %c0_4 = arith.constant 0 : index
    %c0_5 = arith.constant 0 : index
    %4 = vector.load %arg4[%c0_4, %c0_5] : memref<1x32xf32, #tpu.memory_space<vmem>>, vector<1x32xf32>
    %5 = vector.broadcast %4 : vector<1x32xf32> to vector<512x32xf32>
    %6 = arith.addf %3, %5 : vector<512x32xf32>
    %c0_6 = arith.constant 0 : index
    %c0_7 = arith.constant 0 : index
    %c0_8 = arith.constant 0 : index
    %7 = vector.load %arg5[%c0_6, %c0_7, %c0_8] : memref<1x512x32xf32, #tpu.memory_space<vmem>>, vector<1x512x32xf32>
    %8 = vector.shape_cast %7 : vector<1x512x32xf32> to vector<512x32xf32>
    %9 = vector.shape_cast %6 : vector<512x32xf32> to vector<1x512x32xf32>
    tpu.vector_store %arg5[%c0_6, %c0_7, %c0_8], %9 {strides = array<i32>} : memref<1x512x32xf32, #tpu.memory_space<vmem>>, vector<1x512x32xf32>,
    return
  }
  func.func @transform_0(%arg0: i32, %arg1: i32) -> (i32, i32, i32) {
    %c0_i32 = arith.constant 0 : i32
    %c0_i32_0 = arith.constant 0 : i32
    return %arg0, %arg1, %c0_i32 : i32, i32, i32
  }
  func.func @transform_1(%arg0: i32, %arg1: i32) -> (i32, i32) {
    %c0_i32 = arith.constant 0 : i32
    %c0_i32_0 = arith.constant 0 : i32
    %c0_i32_1 = arith.constant 0 : i32
    return %c0_i32, %c0_i32_0 : i32, i32
  }
  func.func @transform_2(%arg0: i32, %arg1: i32) -> (i32, i32) {
    %c0_i32 = arith.constant 0 : i32
    %c0_i32_0 = arith.constant 0 : i32
    %c0_i32_1 = arith.constant 0 : i32
    return %c0_i32, %c0_i32_0 : i32, i32
  }
  func.func @transform_3(%arg0: i32, %arg1: i32) -> (i32, i32, i32) {
    %c0_i32 = arith.constant 0 : i32
    %c0_i32_0 = arith.constant 0 : i32
    return %arg0, %arg1, %c0_i32 : i32, i32, i32
  }
}

module attributes {stable_mosaic.version = 11 : i64} {
  func.func @_patch_embed_kernel(%arg0: i32, %arg1: i32, %arg2: memref<1x512x16xf32, #tpu.memory_space<vmem>>, %arg3: memref<16x32xf32, #tpu.memory_space<vmem>>, %arg4: memref<1x32xf32, #tpu.memory_space<vmem>>, %arg5: memref<1x512x32xf32, #tpu.memory_space<vmem>>) attributes {dimension_semantics = [#tpu.dimension_semantics<parallel>, #tpu.dimension_semantics<parallel>], iteration_bounds = array<i64: 2, 1>, scalar_prefetch = 0 : i64, scratch_operands = 0 : i64, tpu.core_type = #tpu.core_type<tc>, window_params = [{transform_indices = @transform_0, window_bounds = array<i64: 1, 512, 16>}, {pipeline_mode = #tpu.pipeline_mode<synchronous>, transform_indices = @transform_1, window_bounds = array<i64: 16, 32>}, {pipeline_mode = #tpu.pipeline_mode<synchronous>, transform_indices = @transform_2, window_bounds = array<i64: 1, 32>}, {transform_indices = @transform_3, window_bounds = array<i64: 1, 512, 32>}]} {
    %c0 = arith.constant 0 : index
    %c0_0 = arith.constant 0 : index
    %c0_1 = arith.constant 0 : index
    %0 = vector.load %arg2[%c0, %c0_0, %c0_1] : memref<1x512x16xf32, #tpu.memory_space<vmem>>, vector<1x512x16xf32>
    %1 = vector.shape_cast %0 : vector<1x512x16xf32> to vector<512x16xf32>
    %c0_2 = arith.constant 0 : index
    %c0_3 = arith.constant 0 : index
    %2 = vector.load %arg3[%c0_2, %c0_3] : memref<16x32xf32, #tpu.memory_space<vmem>>, vector<16x32xf32>
    %cst = arith.constant dense<0.000000e+00> : vector<512x32xf32>
    %3 = tpu.matmul %1, %2, %cst {dimension_numbers = #tpu.dot_dimension_numbers<[1], [0], [0], [1], [0, 0, 1, 1], [], []>} : vector<512x16xf32>, vector<16x32xf32>, vector<512x32xf32> -> vector<512x32xf32>
    %c0_4 = arith.constant 0 : index
    %c0_5 = arith.constant 0 : index
    %4 = vector.load %arg4[%c0_4, %c0_5] : memref<1x32xf32, #tpu.memory_space<vmem>>, vector<1x32xf32>
    %5 = vector.broadcast %4 : vector<1x32xf32> to vector<512x32xf32>
    %6 = arith.addf %3, %5 : vector<512x32xf32>
    %c0_6 = arith.constant 0 : index
    %c0_7 = arith.constant 0 : index
    %c0_8 = arith.constant 0 : index
    %7 = vector.load %arg5[%c0_6, %c0_7, %c0_8] : memref<1x512x32xf32, #tpu.memory_space<vmem>>, vector<1x512x32xf32>
    %8 = vector.shape_cast %7 : vector<1x512x32xf32> to vector<512x32xf32>
    %9 = vector.shape_cast %6 : vector<512x32xf32> to vector<1x512x32xf32>
    tpu.vector_store %arg5[%c0_6, %c0_7, %c0_8], %9 {strides = array<i32>} : memref<1x512x32xf32, #tpu.memory_space<vmem>>, vector<1x512x32xf32>,
    return
  }
  func.func @transform_0(%arg0: i32, %arg1: i32) -> (i32, i32, i32) {
    %c0_i32 = arith.constant 0 : i32
    %c0_i32_0 = arith.constant 0 : i32
    return %arg0, %arg1, %c0_i32 : i32, i32, i32
  }
  func.func @transform_1(%arg0: i32, %arg1: i32) -> (i32, i32) {
    %c0_i32 = arith.constant 0 : i32
    %c0_i32_0 = arith.constant 0 : i32
    %c0_i32_1 = arith.constant 0 : i32
    return %c0_i32, %c0_i32_0 : i32, i32
  }
  func.func @transform_2(%arg0: i32, %arg1: i32) -> (i32, i32) {
    %c0_i32 = arith.constant 0 : i32
    %c0_i32_0 = arith.constant 0 : i32
    %c0_i32_1 = arith.constant 0 : i32
    return %c0_i32, %c0_i32_0 : i32, i32
  }
  func.func @transform_3(%arg0: i32, %arg1: i32) -> (i32, i32, i32) {
    %c0_i32 = arith.constant 0 : i32
    %c0_i32_0 = arith.constant 0 : i32
    return %arg0, %arg1, %c0_i32 : i32, i32, i32
  }
}

module attributes {stable_mosaic.version = 11 : i64} {
  func.func @_patch_embed_kernel(%arg0: i32, %arg1: i32, %arg2: memref<1x512x16xf32, #tpu.memory_space<vmem>>, %arg3: memref<16x32xf32, #tpu.memory_space<vmem>>, %arg4: memref<1x32xf32, #tpu.memory_space<vmem>>, %arg5: memref<1x512x32xf32, #tpu.memory_space<vmem>>) attributes {dimension_semantics = [#tpu.dimension_semantics<parallel>, #tpu.dimension_semantics<parallel>], iteration_bounds = array<i64: 2, 1>, scalar_prefetch = 0 : i64, scratch_operands = 0 : i64, tpu.core_type = #tpu.core_type<tc>, window_params = [{transform_indices = @transform_0, window_bounds = array<i64: 1, 512, 16>}, {pipeline_mode = #tpu.pipeline_mode<synchronous>, transform_indices = @transform_1, window_bounds = array<i64: 16, 32>}, {pipeline_mode = #tpu.pipeline_mode<synchronous>, transform_indices = @transform_2, window_bounds = array<i64: 1, 32>}, {transform_indices = @transform_3, window_bounds = array<i64: 1, 512, 32>}]} {
    %c0 = arith.constant 0 : index
    %c0_0 = arith.constant 0 : index
    %c0_1 = arith.constant 0 : index
    %0 = vector.load %arg2[%c0, %c0_0, %c0_1] : memref<1x512x16xf32, #tpu.memory_space<vmem>>, vector<1x512x16xf32>
    %1 = vector.shape_cast %0 : vector<1x512x16xf32> to vector<512x16xf32>
    %c0_2 = arith.constant 0 : index
    %c0_3 = arith.constant 0 : index
    %2 = vector.load %arg3[%c0_2, %c0_3] : memref<16x32xf32, #tpu.memory_space<vmem>>, vector<16x32xf32>
    %cst = arith.constant dense<0.000000e+00> : vector<512x32xf32>
    %3 = tpu.matmul %1, %2, %cst {dimension_numbers = #tpu.dot_dimension_numbers<[1], [0], [0], [1], [0, 0, 1, 1], [], []>} : vector<512x16xf32>, vector<16x32xf32>, vector<512x32xf32> -> vector<512x32xf32>
    %c0_4 = arith.constant 0 : index
    %c0_5 = arith.constant 0 : index
    %4 = vector.load %arg4[%c0_4, %c0_5] : memref<1x32xf32, #tpu.memory_space<vmem>>, vector<1x32xf32>
    %5 = vector.broadcast %4 : vector<1x32xf32> to vector<512x32xf32>
    %6 = arith.addf %3, %5 : vector<512x32xf32>
    %c0_6 = arith.constant 0 : index
    %c0_7 = arith.constant 0 : index
    %c0_8 = arith.constant 0 : index
    %7 = vector.load %arg5[%c0_6, %c0_7, %c0_8] : memref<1x512x32xf32, #tpu.memory_space<vmem>>, vector<1x512x32xf32>
    %8 = vector.shape_cast %7 : vector<1x512x32xf32> to vector<512x32xf32>
    %9 = vector.shape_cast %6 : vector<512x32xf32> to vector<1x512x32xf32>
    tpu.vector_store %arg5[%c0_6, %c0_7, %c0_8], %9 {strides = array<i32>} : memref<1x512x32xf32, #tpu.memory_space<vmem>>, vector<1x512x32xf32>,
    return
  }
  func.func @transform_0(%arg0: i32, %arg1: i32) -> (i32, i32, i32) {
    %c0_i32 = arith.constant 0 : i32
    %c0_i32_0 = arith.constant 0 : i32
    return %arg0, %arg1, %c0_i32 : i32, i32, i32
  }
  func.func @transform_1(%arg0: i32, %arg1: i32) -> (i32, i32) {
    %c0_i32 = arith.constant 0 : i32
    %c0_i32_0 = arith.constant 0 : i32
    %c0_i32_1 = arith.constant 0 : i32
    return %c0_i32, %c0_i32_0 : i32, i32
  }
  func.func @transform_2(%arg0: i32, %arg1: i32) -> (i32, i32) {
    %c0_i32 = arith.constant 0 : i32
    %c0_i32_0 = arith.constant 0 : i32
    %c0_i32_1 = arith.constant 0 : i32
    return %c0_i32, %c0_i32_0 : i32, i32
  }
  func.func @transform_3(%arg0: i32, %arg1: i32) -> (i32, i32, i32) {
    %c0_i32 = arith.constant 0 : i32
    %c0_i32_0 = arith.constant 0 : i32
    return %arg0, %arg1, %c0_i32 : i32, i32, i32
  }
}

</mosaic_0001>

<bundles_post_ra>
// kernel: tpu_custom_call.1
= control target key start
LH: loop header
LB: loop body
LE: loop exit
PB: predicated region body
PF: predicated region fallthrough
CT: control target
= control target key end

     0   :  { %s986_s12 = smov 0   ;;  %s988_s13 = smov 0   ;;  %s1361_s0 = inlined_call_operand.vmem [shape: f32[2,512,16], index: 0, kind: input, shape index: {}]   ;;  %s1362_s1 = inlined_call_operand.vmem [shape: f32[16,32], index: 1, kind: input, shape index: {}]   ;;  %s1363_s2 = inlined_call_operand.vmem [shape: f32[1,32], index: 2, kind: input, shape index: {}]   ;;  %s1364_s3 = inlined_call_operand.vmem [shape: f32[2,512,32], index: 3, kind: output, shape index: {}]  }
   0x1   :  { %s990_s14 = smov 0  }
   0x2 LB: > { %s25_s15 = sadd.s32 1, %s960_s13  ;;  %p838_p0 = scmp.ge.s32.totalorder %s964_s14, 1  ;;  %s964_s14 = sphi %s990_s14, %s13_s14   ;;  %s960_s13 = sphi %s988_s13, %s1366_s13   ;;  %s956_s12 = sphi %s986_s12, %s1365_s12  }
   0x3   : > { %p27_p1 = scmp.ge.s32.totalorder %s25_s15, 2  ;;  %p158_p2 = scmp.lt.s32.totalorder %s964_s14, 3 }
   0x5   : > { %s1368_s15 = smov (%p27_p1, %s25_s15), 0  ;;  %p159_p3 = pnand %p838_p0, %p158_p2 }
   0x6   : > { %p191_p4 = scmp.lt.s32.totalorder (!%p159_p3), %s956_s12, 1 }
   0x7   : > { %162 = sbr.rel (%p159_p3) target bundleno = 273 (0x111), region = 32 }
   0xc   : > { %v275_v0 = vld [vmem:[%s1362_s1 + $0x8] sm:$0xff]  ;;  %v274_v1 = vld [vmem:[%s1362_s1] sm:$0xff]  ;;  %s1370_s12 = smov (!%p191_p4, %s956_s12), 1  ;;  %vm280_vm0 = vcmask 130048   ;;  %vm682_vm1 = vcmask 261120  }
   0xd   : > { %912 = vmatpush.msra.mxu2 %v275_v0  ;;  %913 = vmatpush.msra.mxu3 %v275_v0  ;;  %s909_s20 = sshll.u32 %s1370_s12, 9 }
   0xe   : > { %487 = vmatpush.msra.mxu0 %v275_v0  ;;  %911 = vmatpush.msra.mxu1 %v275_v0  ;;  %s1018_s23 = scalar_lea.vmem %s1361_s0, %s909_s20  ;;  %s1158_s28 = scalar_lea.vmem %s1364_s3, %s909_s20 }
   0xf   : > { %915 = vmatpush.msra.mxu2 %v274_v1  ;;  %916 = vmatpush.msra.mxu3 %v274_v1  ;;  %v242_v2 = vld [vmem:[%s1018_s23 + $0x100] sm:$0xff]  ;;  %v243_v6 = vld [vmem:[%s1018_s23 + $0x108] sm:$0xff]  ;;  %v244_v10 = vld [vmem:[%s1018_s23 + $0x110] sm:$0xff] }
  0x10   : > { %488 = vmatpush.msra.mxu0 %v274_v1  ;;  %914 = vmatpush.msra.mxu1 %v274_v1  ;;  %v258_v3 = vld [vmem:[%s1018_s23 + $0x180] sm:$0xff]  ;;  %v259_v7 = vld [vmem:[%s1018_s23 + $0x188] sm:$0xff]  ;;  %v260_v11 = vld [vmem:[%s1018_s23 + $0x190] sm:$0xff] }
  0x11   : > { %v210_v4 = vld [vmem:[%s1018_s23] sm:$0xff]  ;;  %875 = vmatmul.msk.f32.vlgmr.msra.gmra.mxu2 %vm280_vm0, %v242_v2  ;;  %891 = vmatmul.msk.f32.vlgmr.msra.gmra.mxu3 %vm280_vm0, %v258_v3  ;;  %v211_v8 = vld [vmem:[%s1018_s23 + $0x8] sm:$0xff]  ;;  %v212_v12 = vld [vmem:[%s1018_s23 + $0x10] sm:$0xff] }
  0x12   : > { %v226_v5 = vld [vmem:[%s1018_s23 + $0x80] sm:$0xff]  ;;  %843 = vmatmul.msk.f32.vlgmr.msra.gmra.mxu0 %vm280_vm0, %v210_v4  ;;  %v227_v9 = vld [vmem:[%s1018_s23 + $0x88] sm:$0xff]  ;;  %v228_v13 = vld [vmem:[%s1018_s23 + $0x90] sm:$0xff] }
  0x13   : > { %859 = vmatmul.msk.f32.vlgmr.msra.gmra.mxu1 %vm280_vm0, %v226_v5  ;;  %v245_v14 = vld [vmem:[%s1018_s23 + $0x118] sm:$0xff]  ;;  %v246_v18 = vld [vmem:[%s1018_s23 + $0x120] sm:$0xff]  ;;  %v247_v22 = vld [vmem:[%s1018_s23 + $0x128] sm:$0xff] }
  0x14   : > { %v261_v15 = vld [vmem:[%s1018_s23 + $0x198] sm:$0xff]  ;;  %v262_v19 = vld [vmem:[%s1018_s23 + $0x1a0] sm:$0xff]  ;;  %v263_v23 = vld [vmem:[%s1018_s23 + $0x1a8] sm:$0xff] }
  0x15   : > { %v213_v16 = vld [vmem:[%s1018_s23 + $0x18] sm:$0xff]  ;;  %v214_v20 = vld [vmem:[%s1018_s23 + $0x20] sm:$0xff]  ;;  %v215_v24 = vld [vmem:[%s1018_s23 + $0x28] sm:$0xff] }
  0x16   : > { %v229_v17 = vld [vmem:[%s1018_s23 + $0x98] sm:$0xff]  ;;  %v230_v21 = vld [vmem:[%s1018_s23 + $0xa0] sm:$0xff]  ;;  %v231_v25 = vld [vmem:[%s1018_s23 + $0xa8] sm:$0xff] }
  0x17   : > { %v248_v26 = vld [vmem:[%s1018_s23 + $0x130] sm:$0xff]  ;;  %v249_v30 = vld [vmem:[%s1018_s23 + $0x138] sm:$0xff]  ;;  %v250_v34 = vld [vmem:[%s1018_s23 + $0x140] sm:$0xff] }
  0x18   : > { %v264_v27 = vld [vmem:[%s1018_s23 + $0x1b0] sm:$0xff]  ;;  %v265_v31 = vld [vmem:[%s1018_s23 + $0x1b8] sm:$0xff]  ;;  %v266_v35 = vld [vmem:[%s1018_s23 + $0x1c0] sm:$0xff] }
  0x19   : > { %876 = vmatmul.msk.f32.gmra.mxu2 %vm280_vm0, %v243_v6  ;;  %892 = vmatmul.msk.f32.gmra.mxu3 %vm280_vm0, %v259_v7  ;;  %v216_v28 = vld [vmem:[%s1018_s23 + $0x30] sm:$0xff]  ;;  %v217_v32 = vld [vmem:[%s1018_s23 + $0x38] sm:$0xff]  ;;  %v218_v36 = vld [vmem:[%s1018_s23 + $0x40] sm:$0xff] }
  0x1a   : > { %844 = vmatmul.msk.f32.gmra.mxu0 %vm280_vm0, %v211_v8  ;;  %v232_v29 = vld [vmem:[%s1018_s23 + $0xb0] sm:$0xff]  ;;  %v233_v33 = vld [vmem:[%s1018_s23 + $0xb8] sm:$0xff]  ;;  %v234_v37 = vld [vmem:[%s1018_s23 + $0xc0] sm:$0xff] }
  0x1b   : > { %860 = vmatmul.msk.f32.gmra.mxu1 %vm280_vm0, %v227_v9  ;;  %v251_v38 = vld [vmem:[%s1018_s23 + $0x148] sm:$0xff]  ;;  %v252_v42 = vld [vmem:[%s1018_s23 + $0x150] sm:$0xff]  ;;  %v253_v46 = vld [vmem:[%s1018_s23 + $0x158] sm:$0xff] }
  0x1c   : > { %v267_v39 = vld [vmem:[%s1018_s23 + $0x1c8] sm:$0xff]  ;;  %v268_v43 = vld [vmem:[%s1018_s23 + $0x1d0] sm:$0xff]  ;;  %v269_v47 = vld [vmem:[%s1018_s23 + $0x1d8] sm:$0xff] }
  0x1d   : > { %v219_v40 = vld [vmem:[%s1018_s23 + $0x48] sm:$0xff]  ;;  %v220_v44 = vld [vmem:[%s1018_s23 + $0x50] sm:$0xff]  ;;  %v221_v48 = vld [vmem:[%s1018_s23 + $0x58] sm:$0xff] }
  0x1e   : > { %v235_v41 = vld [vmem:[%s1018_s23 + $0xc8] sm:$0xff]  ;;  %v236_v45 = vld [vmem:[%s1018_s23 + $0xd0] sm:$0xff]  ;;  %v237_v49 = vld [vmem:[%s1018_s23 + $0xd8] sm:$0xff] }
  0x1f   : > { %v254_v50 = vld [vmem:[%s1018_s23 + $0x160] sm:$0xff]  ;;  %v255_v54 = vld [vmem:[%s1018_s23 + $0x168] sm:$0xff]  ;;  %v256_v58 = vld [vmem:[%s1018_s23 + $0x170] sm:$0xff] }
  0x20   : > { %v270_v51 = vld [vmem:[%s1018_s23 + $0x1e0] sm:$0xff]  ;;  %v271_v55 = vld [vmem:[%s1018_s23 + $0x1e8] sm:$0xff]  ;;  %v272_v59 = vld [vmem:[%s1018_s23 + $0x1f0] sm:$0xff] }
  0x21   : > { %877 = vmatmul.msk.f32.gmra.mxu2 %vm280_vm0, %v244_v10  ;;  %893 = vmatmul.msk.f32.gmra.mxu3 %vm280_vm0, %v260_v11  ;;  %v222_v52 = vld [vmem:[%s1018_s23 + $0x60] sm:$0xff]  ;;  %v223_v56 = vld [vmem:[%s1018_s23 + $0x68] sm:$0xff]  ;;  %v224_v60 = vld [vmem:[%s1018_s23 + $0x70] sm:$0xff] }
  0x22   : > { %845 = vmatmul.msk.f32.gmra.mxu0 %vm280_vm0, %v212_v12  ;;  %v238_v53 = vld [vmem:[%s1018_s23 + $0xe0] sm:$0xff]  ;;  %v239_v57 = vld [vmem:[%s1018_s23 + $0xe8] sm:$0xff]  ;;  %v240_v61 = vld [vmem:[%s1018_s23 + $0xf0] sm:$0xff] }
  0x23   : > { %861 = vmatmul.msk.f32.gmra.mxu1 %vm280_vm0, %v228_v13  ;;  %v257_v62 = vld [vmem:[%s1018_s23 + $0x178] sm:$0xff]  ;;  %v1151_v2 = vld [vmem:[%s1363_s2] ss:$0 sm:$0xff] }
  0x24   : > { %v273_v63 = vld [vmem:[%s1018_s23 + $0x1f8] sm:$0xff] }
  0x25   : > { %v225_v0 = vld [vmem:[%s1018_s23 + $0x78] sm:$0xff] }
  0x26   : > { %v241_v1 = vld [vmem:[%s1018_s23 + $0xf8] sm:$0xff] }
  0x29   : > { %878 = vmatmul.msk.f32.gmra.mxu2 %vm280_vm0, %v245_v14  ;;  %894 = vmatmul.msk.f32.gmra.mxu3 %vm280_vm0, %v261_v15 }
  0x2a   : > { %846 = vmatmul.msk.f32.gmra.mxu0 %vm280_vm0, %v213_v16 }
  0x2b   : > { %862 = vmatmul.msk.f32.gmra.mxu1 %vm280_vm0, %v229_v17 }
  0x31   : > { %879 = vmatmul.msk.f32.gmra.mxu2 %vm280_vm0, %v246_v18  ;;  %895 = vmatmul.msk.f32.gmra.mxu3 %vm280_vm0, %v262_v19 }
  0x32   : > { %847 = vmatmul.msk.f32.gmra.mxu0 %vm280_vm0, %v214_v20 }
  0x33   : > { %863 = vmatmul.msk.f32.gmra.mxu1 %vm280_vm0, %v230_v21 }
  0x39   : > { %880 = vmatmul.msk.f32.gmra.mxu2 %vm280_vm0, %v247_v22  ;;  %896 = vmatmul.msk.f32.gmra.mxu3 %vm280_vm0, %v263_v23 }
  0x3a   : > { %848 = vmatmul.msk.f32.gmra.mxu0 %vm280_vm0, %v215_v24 }
  0x3b   : > { %864 = vmatmul.msk.f32.gmra.mxu1 %vm280_vm0, %v231_v25 }
  0x41   : > { %881 = vmatmul.msk.f32.gmra.mxu2 %vm280_vm0, %v248_v26  ;;  %897 = vmatmul.msk.f32.gmra.mxu3 %vm280_vm0, %v264_v27 }
  0x42   : > { %849 = vmatmul.msk.f32.gmra.mxu0 %vm280_vm0, %v216_v28 }
  0x43   : > { %865 = vmatmul.msk.f32.gmra.mxu1 %vm280_vm0, %v232_v29 }
  0x49   : > { %882 = vmatmul.msk.f32.gmra.mxu2 %vm280_vm0, %v249_v30  ;;  %898 = vmatmul.msk.f32.gmra.mxu3 %vm280_vm0, %v265_v31 }
  0x4a   : > { %850 = vmatmul.msk.f32.gmra.mxu0 %vm280_vm0, %v217_v32 }
  0x4b   : > { %866 = vmatmul.msk.f32.gmra.mxu1 %vm280_vm0, %v233_v33 }
  0x51   : > { %883 = vmatmul.msk.f32.gmra.mxu2 %vm280_vm0, %v250_v34  ;;  %899 = vmatmul.msk.f32.gmra.mxu3 %vm280_vm0, %v266_v35 }
  0x52   : > { %851 = vmatmul.msk.f32.gmra.mxu0 %vm280_vm0, %v218_v36 }
  0x53   : > { %867 = vmatmul.msk.f32.gmra.mxu1 %vm280_vm0, %v234_v37 }
  0x59   : > { %884 = vmatmul.msk.f32.gmra.mxu2 %vm280_vm0, %v251_v38  ;;  %900 = vmatmul.msk.f32.gmra.mxu3 %vm280_vm0, %v267_v39 }
  0x5a   : > { %852 = vmatmul.msk.f32.gmra.mxu0 %vm280_vm0, %v219_v40 }
  0x5b   : > { %868 = vmatmul.msk.f32.gmra.mxu1 %vm280_vm0, %v235_v41 }
  0x61   : > { %885 = vmatmul.msk.f32.gmra.mxu2 %vm280_vm0, %v252_v42  ;;  %901 = vmatmul.msk.f32.gmra.mxu3 %vm280_vm0, %v268_v43 }
  0x62   : > { %853 = vmatmul.msk.f32.gmra.mxu0 %vm280_vm0, %v220_v44 }
  0x63   : > { %869 = vmatmul.msk.f32.gmra.mxu1 %vm280_vm0, %v236_v45 }
  0x69   : > { %886 = vmatmul.msk.f32.gmra.mxu2 %vm280_vm0, %v253_v46  ;;  %902 = vmatmul.msk.f32.gmra.mxu3 %vm280_vm0, %v269_v47 }
  0x6a   : > { %854 = vmatmul.msk.f32.gmra.mxu0 %vm280_vm0, %v221_v48 }
  0x6b   : > { %870 = vmatmul.msk.f32.gmra.mxu1 %vm280_vm0, %v237_v49 }
  0x71   : > { %887 = vmatmul.msk.f32.gmra.mxu2 %vm280_vm0, %v254_v50  ;;  %903 = vmatmul.msk.f32.gmra.mxu3 %vm280_vm0, %v270_v51 }
  0x72   : > { %855 = vmatmul.msk.f32.gmra.mxu0 %vm280_vm0, %v222_v52 }
  0x73   : > { %871 = vmatmul.msk.f32.gmra.mxu1 %vm280_vm0, %v238_v53 }
  0x79   : > { %888 = vmatmul.msk.f32.gmra.mxu2 %vm280_vm0, %v255_v54  ;;  %904 = vmatmul.msk.f32.gmra.mxu3 %vm280_vm0, %v271_v55 }
  0x7a   : > { %856 = vmatmul.msk.f32.gmra.mxu0 %vm280_vm0, %v223_v56 }
  0x7b   : > { %872 = vmatmul.msk.f32.gmra.mxu1 %vm280_vm0, %v239_v57 }
  0x81   : > { %889 = vmatmul.msk.f32.gmra.mxu2 %vm280_vm0, %v256_v58  ;;  %905 = vmatmul.msk.f32.gmra.mxu3 %vm280_vm0, %v272_v59 }
  0x82   : > { %857 = vmatmul.msk.f32.gmra.mxu0 %vm280_vm0, %v224_v60 }
  0x83   : > { %873 = vmatmul.msk.f32.gmra.mxu1 %vm280_vm0, %v240_v61 }
  0x89   : > { %890 = vmatmul.msk.f32.gmra.mxu2 %vm280_vm0, %v257_v62  ;;  %906 = vmatmul.msk.f32.gmra.mxu3 %vm280_vm0, %v273_v63 }
  0x8a   : > { %858 = vmatmul.msk.f32.gmra.mxu0 %vm280_vm0, %v225_v0 }
  0x8b   : > { %874 = vmatmul.msk.f32.gmra.mxu1 %vm280_vm0, %v241_v1 }
  0x8f   : > { %v490_v3 = vpop.f32.mrf.mxu0 }
  0x90   : > { %v538_v4 = vpop.f32.mrf.mxu1  ;;  %v491_v5 = vadd.f32 %v1151_v2, %v490_v3 }
  0x91   : > { %v539_v6 = vadd.f32 %v1151_v2, %v538_v4 }
  0x92   : > { %683 = vst.msk [vmem:[%s1158_s28] sm:$0xff] %vm682_vm1, %v491_v5 }
  0x93   : > { %699 = vst.msk [vmem:[%s1158_s28 + $0x80] sm:$0xff] %vm682_vm1, %v539_v6 }
  0x94   : > { %v586_v7 = vpop.f32.mrf.mxu2  ;;  %v634_v8 = vpop.f32.mrf.mxu3 }
  0x95   : > { %v587_v9 = vadd.f32 %v1151_v2, %v586_v7  ;;  %v635_v10 = vadd.f32 %v1151_v2, %v634_v8 }
  0x97   : > { %715 = vst.msk [vmem:[%s1158_s28 + $0x100] sm:$0xff] %vm682_vm1, %v587_v9  ;;  %v493_v11 = vpop.f32.mrf.mxu0 }
  0x98   : > { %v541_v12 = vpop.f32.mrf.mxu1  ;;  %731 = vst.msk [vmem:[%s1158_s28 + $0x180] sm:$0xff] %vm682_vm1, %v635_v10  ;;  %v494_v13 = vadd.f32 %v1151_v2, %v493_v11 }
  0x99   : > { %v542_v14 = vadd.f32 %v1151_v2, %v541_v12 }
  0x9a   : > { %684 = vst.msk [vmem:[%s1158_s28 + $0x8] sm:$0xff] %vm682_vm1, %v494_v13 }
  0x9b   : > { %700 = vst.msk [vmem:[%s1158_s28 + $0x88] sm:$0xff] %vm682_vm1, %v542_v14 }
  0x9c   : > { %v589_v15 = vpop.f32.mrf.mxu2  ;;  %v637_v16 = vpop.f32.mrf.mxu3 }
  0x9d   : > { %v590_v17 = vadd.f32 %v1151_v2, %v589_v15  ;;  %v638_v18 = vadd.f32 %v1151_v2, %v637_v16 }
  0x9f   : > { %716 = vst.msk [vmem:[%s1158_s28 + $0x108] sm:$0xff] %vm682_vm1, %v590_v17  ;;  %v496_v19 = vpop.f32.mrf.mxu0 }
  0xa0   : > { %v544_v20 = vpop.f32.mrf.mxu1  ;;  %732 = vst.msk [vmem:[%s1158_s28 + $0x188] sm:$0xff] %vm682_vm1, %v638_v18  ;;  %v497_v21 = vadd.f32 %v1151_v2, %v496_v19 }
  0xa1   : > { %v545_v22 = vadd.f32 %v1151_v2, %v544_v20 }
  0xa2   : > { %685 = vst.msk [vmem:[%s1158_s28 + $0x10] sm:$0xff] %vm682_vm1, %v497_v21 }
  0xa3   : > { %701 = vst.msk [vmem:[%s1158_s28 + $0x90] sm:$0xff] %vm682_vm1, %v545_v22 }
  0xa4   : > { %v592_v23 = vpop.f32.mrf.mxu2  ;;  %v640_v24 = vpop.f32.mrf.mxu3 }
  0xa5   : > { %v593_v25 = vadd.f32 %v1151_v2, %v592_v23  ;;  %v641_v26 = vadd.f32 %v1151_v2, %v640_v24 }
  0xa7   : > { %717 = vst.msk [vmem:[%s1158_s28 + $0x110] sm:$0xff] %vm682_vm1, %v593_v25  ;;  %v499_v27 = vpop.f32.mrf.mxu0 }
  0xa8   : > { %v547_v28 = vpop.f32.mrf.mxu1  ;;  %733 = vst.msk [vmem:[%s1158_s28 + $0x190] sm:$0xff] %vm682_vm1, %v641_v26  ;;  %v500_v29 = vadd.f32 %v1151_v2, %v499_v27 }
  0xa9   : > { %v548_v30 = vadd.f32 %v1151_v2, %v547_v28 }
  0xaa   : > { %686 = vst.msk [vmem:[%s1158_s28 + $0x18] sm:$0xff] %vm682_vm1, %v500_v29 }
  0xab   : > { %702 = vst.msk [vmem:[%s1158_s28 + $0x98] sm:$0xff] %vm682_vm1, %v548_v30 }
  0xac   : > { %v595_v31 = vpop.f32.mrf.mxu2  ;;  %v643_v32 = vpop.f32.mrf.mxu3 }
  0xad   : > { %v596_v33 = vadd.f32 %v1151_v2, %v595_v31  ;;  %v644_v34 = vadd.f32 %v1151_v2, %v643_v32 }
  0xaf   : > { %718 = vst.msk [vmem:[%s1158_s28 + $0x118] sm:$0xff] %vm682_vm1, %v596_v33  ;;  %v502_v35 = vpop.f32.mrf.mxu0 }
  0xb0   : > { %v550_v36 = vpop.f32.mrf.mxu1  ;;  %734 = vst.msk [vmem:[%s1158_s28 + $0x198] sm:$0xff] %vm682_vm1, %v644_v34  ;;  %v503_v37 = vadd.f32 %v1151_v2, %v502_v35 }
  0xb1   : > { %v551_v38 = vadd.f32 %v1151_v2, %v550_v36 }
  0xb2   : > { %687 = vst.msk [vmem:[%s1158_s28 + $0x20] sm:$0xff] %vm682_vm1, %v503_v37 }
  0xb3   : > { %703 = vst.msk [vmem:[%s1158_s28 + $0xa0] sm:$0xff] %vm682_vm1, %v551_v38 }
  0xb4   : > { %v598_v39 = vpop.f32.mrf.mxu2  ;;  %v646_v40 = vpop.f32.mrf.mxu3 }
  0xb5   : > { %v599_v41 = vadd.f32 %v1151_v2, %v598_v39  ;;  %v647_v42 = vadd.f32 %v1151_v2, %v646_v40 }
  0xb7   : > { %719 = vst.msk [vmem:[%s1158_s28 + $0x120] sm:$0xff] %vm682_vm1, %v599_v41  ;;  %v505_v43 = vpop.f32.mrf.mxu0 }
  0xb8   : > { %v553_v44 = vpop.f32.mrf.mxu1  ;;  %735 = vst.msk [vmem:[%s1158_s28 + $0x1a0] sm:$0xff] %vm682_vm1, %v647_v42  ;;  %v506_v45 = vadd.f32 %v1151_v2, %v505_v43 }
  0xb9   : > { %v554_v46 = vadd.f32 %v1151_v2, %v553_v44 }
  0xba   : > { %688 = vst.msk [vmem:[%s1158_s28 + $0x28] sm:$0xff] %vm682_vm1, %v506_v45 }
  0xbb   : > { %704 = vst.msk [vmem:[%s1158_s28 + $0xa8] sm:$0xff] %vm682_vm1, %v554_v46 }
  0xbc   : > { %v601_v47 = vpop.f32.mrf.mxu2  ;;  %v649_v48 = vpop.f32.mrf.mxu3 }
  0xbd   : > { %v602_v49 = vadd.f32 %v1151_v2, %v601_v47  ;;  %v650_v50 = vadd.f32 %v1151_v2, %v649_v48 }
  0xbf   : > { %720 = vst.msk [vmem:[%s1158_s28 + $0x128] sm:$0xff] %vm682_vm1, %v602_v49  ;;  %v508_v51 = vpop.f32.mrf.mxu0 }
  0xc0   : > { %v556_v52 = vpop.f32.mrf.mxu1  ;;  %736 = vst.msk [vmem:[%s1158_s28 + $0x1a8] sm:$0xff] %vm682_vm1, %v650_v50  ;;  %v509_v53 = vadd.f32 %v1151_v2, %v508_v51 }
  0xc1   : > { %v557_v54 = vadd.f32 %v1151_v2, %v556_v52 }
  0xc2   : > { %689 = vst.msk [vmem:[%s1158_s28 + $0x30] sm:$0xff] %vm682_vm1, %v509_v53 }
  0xc3   : > { %705 = vst.msk [vmem:[%s1158_s28 + $0xb0] sm:$0xff] %vm682_vm1, %v557_v54 }
  0xc4   : > { %v604_v55 = vpop.f32.mrf.mxu2  ;;  %v652_v56 = vpop.f32.mrf.mxu3 }
  0xc5   : > { %v605_v57 = vadd.f32 %v1151_v2, %v604_v55  ;;  %v653_v58 = vadd.f32 %v1151_v2, %v652_v56 }
  0xc7   : > { %721 = vst.msk [vmem:[%s1158_s28 + $0x130] sm:$0xff] %vm682_vm1, %v605_v57  ;;  %v511_v59 = vpop.f32.mrf.mxu0 }
  0xc8   : > { %v559_v60 = vpop.f32.mrf.mxu1  ;;  %737 = vst.msk [vmem:[%s1158_s28 + $0x1b0] sm:$0xff] %vm682_vm1, %v653_v58  ;;  %v512_v61 = vadd.f32 %v1151_v2, %v511_v59 }
  0xc9   : > { %v560_v62 = vadd.f32 %v1151_v2, %v559_v60 }
  0xca   : > { %690 = vst.msk [vmem:[%s1158_s28 + $0x38] sm:$0xff] %vm682_vm1, %v512_v61 }
  0xcb   : > { %706 = vst.msk [vmem:[%s1158_s28 + $0xb8] sm:$0xff] %vm682_vm1, %v560_v62 }
  0xcc   : > { %v607_v63 = vpop.f32.mrf.mxu2  ;;  %v655_v0 = vpop.f32.mrf.mxu3 }
  0xcd   : > { %v608_v1 = vadd.f32 %v1151_v2, %v607_v63  ;;  %v656_v3 = vadd.f32 %v1151_v2, %v655_v0 }
  0xcf   : > { %722 = vst.msk [vmem:[%s1158_s28 + $0x138] sm:$0xff] %vm682_vm1, %v608_v1  ;;  %v514_v4 = vpop.f32.mrf.mxu0 }
  0xd0   : > { %v562_v5 = vpop.f32.mrf.mxu1  ;;  %738 = vst.msk [vmem:[%s1158_s28 + $0x1b8] sm:$0xff] %vm682_vm1, %v656_v3  ;;  %v515_v6 = vadd.f32 %v1151_v2, %v514_v4 }
  0xd1   : > { %v563_v7 = vadd.f32 %v1151_v2, %v562_v5 }
  0xd2   : > { %691 = vst.msk [vmem:[%s1158_s28 + $0x40] sm:$0xff] %vm682_vm1, %v515_v6 }
  0xd3   : > { %707 = vst.msk [vmem:[%s1158_s28 + $0xc0] sm:$0xff] %vm682_vm1, %v563_v7 }
  0xd4   : > { %v610_v8 = vpop.f32.mrf.mxu2  ;;  %v658_v9 = vpop.f32.mrf.mxu3 }
  0xd5   : > { %v611_v10 = vadd.f32 %v1151_v2, %v610_v8  ;;  %v659_v11 = vadd.f32 %v1151_v2, %v658_v9 }
  0xd7   : > { %723 = vst.msk [vmem:[%s1158_s28 + $0x140] sm:$0xff] %vm682_vm1, %v611_v10  ;;  %v517_v12 = vpop.f32.mrf.mxu0 }
  0xd8   : > { %v565_v13 = vpop.f32.mrf.mxu1  ;;  %739 = vst.msk [vmem:[%s1158_s28 + $0x1c0] sm:$0xff] %vm682_vm1, %v659_v11  ;;  %v518_v14 = vadd.f32 %v1151_v2, %v517_v12 }
  0xd9   : > { %v566_v15 = vadd.f32 %v1151_v2, %v565_v13 }
  0xda   : > { %692 = vst.msk [vmem:[%s1158_s28 + $0x48] sm:$0xff] %vm682_vm1, %v518_v14 }
  0xdb   : > { %708 = vst.msk [vmem:[%s1158_s28 + $0xc8] sm:$0xff] %vm682_vm1, %v566_v15 }
  0xdc   : > { %v613_v16 = vpop.f32.mrf.mxu2  ;;  %v661_v17 = vpop.f32.mrf.mxu3 }
  0xdd   : > { %v614_v18 = vadd.f32 %v1151_v2, %v613_v16  ;;  %v662_v19 = vadd.f32 %v1151_v2, %v661_v17 }
  0xdf   : > { %724 = vst.msk [vmem:[%s1158_s28 + $0x148] sm:$0xff] %vm682_vm1, %v614_v18  ;;  %v520_v20 = vpop.f32.mrf.mxu0 }
  0xe0   : > { %v568_v21 = vpop.f32.mrf.mxu1  ;;  %740 = vst.msk [vmem:[%s1158_s28 + $0x1c8] sm:$0xff] %vm682_vm1, %v662_v19  ;;  %v521_v22 = vadd.f32 %v1151_v2, %v520_v20 }
  0xe1   : > { %v569_v23 = vadd.f32 %v1151_v2, %v568_v21 }
  0xe2   : > { %693 = vst.msk [vmem:[%s1158_s28 + $0x50] sm:$0xff] %vm682_vm1, %v521_v22 }
  0xe3   : > { %709 = vst.msk [vmem:[%s1158_s28 + $0xd0] sm:$0xff] %vm682_vm1, %v569_v23 }
  0xe4   : > { %v616_v24 = vpop.f32.mrf.mxu2  ;;  %v664_v25 = vpop.f32.mrf.mxu3 }
  0xe5   : > { %v617_v26 = vadd.f32 %v1151_v2, %v616_v24  ;;  %v665_v27 = vadd.f32 %v1151_v2, %v664_v25 }
  0xe7   : > { %725 = vst.msk [vmem:[%s1158_s28 + $0x150] sm:$0xff] %vm682_vm1, %v617_v26  ;;  %v523_v28 = vpop.f32.mrf.mxu0 }
  0xe8   : > { %v571_v29 = vpop.f32.mrf.mxu1  ;;  %741 = vst.msk [vmem:[%s1158_s28 + $0x1d0] sm:$0xff] %vm682_vm1, %v665_v27  ;;  %v524_v30 = vadd.f32 %v1151_v2, %v523_v28 }
  0xe9   : > { %v572_v31 = vadd.f32 %v1151_v2, %v571_v29 }
  0xea   : > { %694 = vst.msk [vmem:[%s1158_s28 + $0x58] sm:$0xff] %vm682_vm1, %v524_v30 }
  0xeb   : > { %710 = vst.msk [vmem:[%s1158_s28 + $0xd8] sm:$0xff] %vm682_vm1, %v572_v31 }
  0xec   : > { %v619_v32 = vpop.f32.mrf.mxu2  ;;  %v667_v33 = vpop.f32.mrf.mxu3 }
  0xed   : > { %v620_v34 = vadd.f32 %v1151_v2, %v619_v32  ;;  %v668_v35 = vadd.f32 %v1151_v2, %v667_v33 }
  0xef   : > { %726 = vst.msk [vmem:[%s1158_s28 + $0x158] sm:$0xff] %vm682_vm1, %v620_v34  ;;  %v526_v36 = vpop.f32.mrf.mxu0 }
  0xf0   : > { %v574_v37 = vpop.f32.mrf.mxu1  ;;  %742 = vst.msk [vmem:[%s1158_s28 + $0x1d8] sm:$0xff] %vm682_vm1, %v668_v35  ;;  %v527_v38 = vadd.f32 %v1151_v2, %v526_v36 }
  0xf1   : > { %v575_v39 = vadd.f32 %v1151_v2, %v574_v37 }
  0xf2   : > { %695 = vst.msk [vmem:[%s1158_s28 + $0x60] sm:$0xff] %vm682_vm1, %v527_v38 }
  0xf3   : > { %711 = vst.msk [vmem:[%s1158_s28 + $0xe0] sm:$0xff] %vm682_vm1, %v575_v39 }
  0xf4   : > { %v622_v40 = vpop.f32.mrf.mxu2  ;;  %v670_v41 = vpop.f32.mrf.mxu3 }
  0xf5   : > { %v623_v42 = vadd.f32 %v1151_v2, %v622_v40  ;;  %v671_v43 = vadd.f32 %v1151_v2, %v670_v41 }
  0xf7   : > { %727 = vst.msk [vmem:[%s1158_s28 + $0x160] sm:$0xff] %vm682_vm1, %v623_v42  ;;  %v529_v44 = vpop.f32.mrf.mxu0 }
  0xf8   : > { %v577_v45 = vpop.f32.mrf.mxu1  ;;  %743 = vst.msk [vmem:[%s1158_s28 + $0x1e0] sm:$0xff] %vm682_vm1, %v671_v43  ;;  %v530_v46 = vadd.f32 %v1151_v2, %v529_v44 }
  0xf9   : > { %v578_v47 = vadd.f32 %v1151_v2, %v577_v45 }
  0xfa   : > { %696 = vst.msk [vmem:[%s1158_s28 + $0x68] sm:$0xff] %vm682_vm1, %v530_v46 }
  0xfb   : > { %712 = vst.msk [vmem:[%s1158_s28 + $0xe8] sm:$0xff] %vm682_vm1, %v578_v47 }
  0xfc   : > { %v625_v48 = vpop.f32.mrf.mxu2  ;;  %v673_v49 = vpop.f32.mrf.mxu3 }
  0xfd   : > { %v626_v50 = vadd.f32 %v1151_v2, %v625_v48  ;;  %v674_v51 = vadd.f32 %v1151_v2, %v673_v49 }
  0xff   : > { %728 = vst.msk [vmem:[%s1158_s28 + $0x168] sm:$0xff] %vm682_vm1, %v626_v50  ;;  %v532_v52 = vpop.f32.mrf.mxu0 }
 0x100   : > { %v580_v53 = vpop.f32.mrf.mxu1  ;;  %744 = vst.msk [vmem:[%s1158_s28 + $0x1e8] sm:$0xff] %vm682_vm1, %v674_v51  ;;  %v533_v54 = vadd.f32 %v1151_v2, %v532_v52 }
 0x101   : > { %v581_v55 = vadd.f32 %v1151_v2, %v580_v53 }
 0x102   : > { %697 = vst.msk [vmem:[%s1158_s28 + $0x70] sm:$0xff] %vm682_vm1, %v533_v54 }
 0x103   : > { %713 = vst.msk [vmem:[%s1158_s28 + $0xf0] sm:$0xff] %vm682_vm1, %v581_v55 }
 0x104   : > { %v628_v56 = vpop.f32.mrf.mxu2  ;;  %v676_v57 = vpop.f32.mrf.mxu3 }
 0x105   : > { %v629_v58 = vadd.f32 %v1151_v2, %v628_v56  ;;  %v677_v59 = vadd.f32 %v1151_v2, %v676_v57 }
 0x107   : > { %729 = vst.msk [vmem:[%s1158_s28 + $0x170] sm:$0xff] %vm682_vm1, %v629_v58  ;;  %v535_v60 = vpop.f32.mrf.mxu0 }
 0x108   : > { %v583_v61 = vpop.f32.mrf.mxu1  ;;  %745 = vst.msk [vmem:[%s1158_s28 + $0x1f0] sm:$0xff] %vm682_vm1, %v677_v59  ;;  %v536_v62 = vadd.f32 %v1151_v2, %v535_v60 }
 0x109   : > { %v584_v63 = vadd.f32 %v1151_v2, %v583_v61 }
 0x10a   : > { %698 = vst.msk [vmem:[%s1158_s28 + $0x78] sm:$0xff] %vm682_vm1, %v536_v62 }
 0x10b   : > { %714 = vst.msk [vmem:[%s1158_s28 + $0xf8] sm:$0xff] %vm682_vm1, %v584_v63 }
 0x10c   : > { %v631_v0 = vpop.f32.mrf.mxu2  ;;  %v679_v1 = vpop.f32.mrf.mxu3 }
 0x10d   : > { %v632_v3 = vadd.f32 %v1151_v2, %v631_v0  ;;  %v680_v4 = vadd.f32 %v1151_v2, %v679_v1 }
 0x10f   : > { %730 = vst.msk [vmem:[%s1158_s28 + $0x178] sm:$0xff] %vm682_vm1, %v632_v3 }
 0x110   : > { %746 = vst.msk [vmem:[%s1158_s28 + $0x1f8] sm:$0xff] %vm682_vm1, %v680_v4 }
 0x111 PF: > { %s13_s14 = sadd.s32 1, %s964_s14   ;;  %s1365_s12 = smov %s960_s13 }
 0x112   : > { %p10_p5 = scmp.ge.s32.totalorder %s13_s14, 4   ;;  %s1366_s13 = smov %s1368_s15 }
 0x114   :  { %12 = sbr.rel (!%p10_p5) target bundleno = 2 (0x2), region = 62 }

// kernel: tpu_custom_call.1
= control target key start
LH: loop header
LB: loop body
LE: loop exit
PB: predicated region body
PF: predicated region fallthrough
CT: control target
= control target key end

     0   :  { %s986_s12 = smov 0   ;;  %s988_s13 = smov 0   ;;  %s1361_s0 = inlined_call_operand.vmem [shape: f32[2,512,16], index: 0, kind: input, shape index: {}]   ;;  %s1362_s1 = inlined_call_operand.vmem [shape: f32[16,32], index: 1, kind: input, shape index: {}]   ;;  %s1363_s2 = inlined_call_operand.vmem [shape: f32[1,32], index: 2, kind: input, shape index: {}]   ;;  %s1364_s3 = inlined_call_operand.vmem [shape: f32[2,512,32], index: 3, kind: output, shape index: {}]  }
   0x1   :  { %s990_s14 = smov 0  }
   0x2 LB: > { %s25_s15 = sadd.s32 1, %s960_s13  ;;  %p838_p0 = scmp.ge.s32.totalorder %s964_s14, 1  ;;  %s964_s14 = sphi %s990_s14, %s13_s14   ;;  %s960_s13 = sphi %s988_s13, %s1366_s13   ;;  %s956_s12 = sphi %s986_s12, %s1365_s12  }
   0x3   : > { %p27_p1 = scmp.ge.s32.totalorder %s25_s15, 2  ;;  %p158_p2 = scmp.lt.s32.totalorder %s964_s14, 3 }
   0x5   : > { %s1368_s15 = smov (%p27_p1, %s25_s15), 0  ;;  %p159_p3 = pnand %p838_p0, %p158_p2 }
   0x6   : > { %p191_p4 = scmp.lt.s32.totalorder (!%p159_p3), %s956_s12, 1 }
   0x7   : > { %162 = sbr.rel (%p159_p3) target bundleno = 273 (0x111), region = 32 }
   0xc   : > { %v275_v0 = vld [vmem:[%s1362_s1 + $0x8] sm:$0xff]  ;;  %v274_v1 = vld [vmem:[%s1362_s1] sm:$0xff]  ;;  %s1370_s12 = smov (!%p191_p4, %s956_s12), 1  ;;  %vm280_vm0 = vcmask 130048   ;;  %vm682_vm1 = vcmask 261120  }
   0xd   : > { %912 = vmatpush.msra.mxu2 %v275_v0  ;;  %913 = vmatpush.msra.mxu3 %v275_v0  ;;  %s909_s20 = sshll.u32 %s1370_s12, 9 }
   0xe   : > { %487 = vmatpush.msra.mxu0 %v275_v0  ;;  %911 = vmatpush.msra.mxu1 %v275_v0  ;;  %s1018_s23 = scalar_lea.vmem %s1361_s0, %s909_s20  ;;  %s1158_s28 = scalar_lea.vmem %s1364_s3, %s909_s20 }
   0xf   : > { %915 = vmatpush.msra.mxu2 %v274_v1  ;;  %916 = vmatpush.msra.mxu3 %v274_v1  ;;  %v242_v2 = vld [vmem:[%s1018_s23 + $0x100] sm:$0xff]  ;;  %v243_v6 = vld [vmem:[%s1018_s23 + $0x108] sm:$0xff]  ;;  %v244_v10 = vld [vmem:[%s1018_s23 + $0x110] sm:$0xff] }
  0x10   : > { %488 = vmatpush.msra.mxu0 %v274_v1  ;;  %914 = vmatpush.msra.mxu1 %v274_v1  ;;  %v258_v3 = vld [vmem:[%s1018_s23 + $0x180] sm:$0xff]  ;;  %v259_v7 = vld [vmem:[%s1018_s23 + $0x188] sm:$0xff]  ;;  %v260_v11 = vld [vmem:[%s1018_s23 + $0x190] sm:$0xff] }
  0x11   : > { %v210_v4 = vld [vmem:[%s1018_s23] sm:$0xff]  ;;  %875 = vmatmul.msk.f32.vlgmr.msra.gmra.mxu2 %vm280_vm0, %v242_v2  ;;  %891 = vmatmul.msk.f32.vlgmr.msra.gmra.mxu3 %vm280_vm0, %v258_v3  ;;  %v211_v8 = vld [vmem:[%s1018_s23 + $0x8] sm:$0xff]  ;;  %v212_v12 = vld [vmem:[%s1018_s23 + $0x10] sm:$0xff] }
  0x12   : > { %v226_v5 = vld [vmem:[%s1018_s23 + $0x80] sm:$0xff]  ;;  %843 = vmatmul.msk.f32.vlgmr.msra.gmra.mxu0 %vm280_vm0, %v210_v4  ;;  %v227_v9 = vld [vmem:[%s1018_s23 + $0x88] sm:$0xff]  ;;  %v228_v13 = vld [vmem:[%s1018_s23 + $0x90] sm:$0xff] }
  0x13   : > { %859 = vmatmul.msk.f32.vlgmr.msra.gmra.mxu1 %vm280_vm0, %v226_v5  ;;  %v245_v14 = vld [vmem:[%s1018_s23 + $0x118] sm:$0xff]  ;;  %v246_v18 = vld [vmem:[%s1018_s23 + $0x120] sm:$0xff]  ;;  %v247_v22 = vld [vmem:[%s1018_s23 + $0x128] sm:$0xff] }
  0x14   : > { %v261_v15 = vld [vmem:[%s1018_s23 + $0x198] sm:$0xff]  ;;  %v262_v19 = vld [vmem:[%s1018_s23 + $0x1a0] sm:$0xff]  ;;  %v263_v23 = vld [vmem:[%s1018_s23 + $0x1a8] sm:$0xff] }
  0x15   : > { %v213_v16 = vld [vmem:[%s1018_s23 + $0x18] sm:$0xff]  ;;  %v214_v20 = vld [vmem:[%s1018_s23 + $0x20] sm:$0xff]  ;;  %v215_v24 = vld [vmem:[%s1018_s23 + $0x28] sm:$0xff] }
  0x16   : > { %v229_v17 = vld [vmem:[%s1018_s23 + $0x98] sm:$0xff]  ;;  %v230_v21 = vld [vmem:[%s1018_s23 + $0xa0] sm:$0xff]  ;;  %v231_v25 = vld [vmem:[%s1018_s23 + $0xa8] sm:$0xff] }
  0x17   : > { %v248_v26 = vld [vmem:[%s1018_s23 + $0x130] sm:$0xff]  ;;  %v249_v30 = vld [vmem:[%s1018_s23 + $0x138] sm:$0xff]  ;;  %v250_v34 = vld [vmem:[%s1018_s23 + $0x140] sm:$0xff] }
  0x18   : > { %v264_v27 = vld [vmem:[%s1018_s23 + $0x1b0] sm:$0xff]  ;;  %v265_v31 = vld [vmem:[%s1018_s23 + $0x1b8] sm:$0xff]  ;;  %v266_v35 = vld [vmem:[%s1018_s23 + $0x1c0] sm:$0xff] }
  0x19   : > { %876 = vmatmul.msk.f32.gmra.mxu2 %vm280_vm0, %v243_v6  ;;  %892 = vmatmul.msk.f32.gmra.mxu3 %vm280_vm0, %v259_v7  ;;  %v216_v28 = vld [vmem:[%s1018_s23 + $0x30] sm:$0xff]  ;;  %v217_v32 = vld [vmem:[%s1018_s23 + $0x38] sm:$0xff]  ;;  %v218_v36 = vld [vmem:[%s1018_s23 + $0x40] sm:$0xff] }
  0x1a   : > { %844 = vmatmul.msk.f32.gmra.mxu0 %vm280_vm0, %v211_v8  ;;  %v232_v29 = vld [vmem:[%s1018_s23 + $0xb0] sm:$0xff]  ;;  %v233_v33 = vld [vmem:[%s1018_s23 + $0xb8] sm:$0xff]  ;;  %v234_v37 = vld [vmem:[%s1018_s23 + $0xc0] sm:$0xff] }
  0x1b   : > { %860 = vmatmul.msk.f32.gmra.mxu1 %vm280_vm0, %v227_v9  ;;  %v251_v38 = vld [vmem:[%s1018_s23 + $0x148] sm:$0xff]  ;;  %v252_v42 = vld [vmem:[%s1018_s23 + $0x150] sm:$0xff]  ;;  %v253_v46 = vld [vmem:[%s1018_s23 + $0x158] sm:$0xff] }
  0x1c   : > { %v267_v39 = vld [vmem:[%s1018_s23 + $0x1c8] sm:$0xff]  ;;  %v268_v43 = vld [vmem:[%s1018_s23 + $0x1d0] sm:$0xff]  ;;  %v269_v47 = vld [vmem:[%s1018_s23 + $0x1d8] sm:$0xff] }
  0x1d   : > { %v219_v40 = vld [vmem:[%s1018_s23 + $0x48] sm:$0xff]  ;;  %v220_v44 = vld [vmem:[%s1018_s23 + $0x50] sm:$0xff]  ;;  %v221_v48 = vld [vmem:[%s1018_s23 + $0x58] sm:$0xff] }
  0x1e   : > { %v235_v41 = vld [vmem:[%s1018_s23 + $0xc8] sm:$0xff]  ;;  %v236_v45 = vld [vmem:[%s1018_s23 + $0xd0] sm:$0xff]  ;;  %v237_v49 = vld [vmem:[%s1018_s23 + $0xd8] sm:$0xff] }
  0x1f   : > { %v254_v50 = vld [vmem:[%s1018_s23 + $0x160] sm:$0xff]  ;;  %v255_v54 = vld [vmem:[%s1018_s23 + $0x168] sm:$0xff]  ;;  %v256_v58 = vld [vmem:[%s1018_s23 + $0x170] sm:$0xff] }
  0x20   : > { %v270_v51 = vld [vmem:[%s1018_s23 + $0x1e0] sm:$0xff]  ;;  %v271_v55 = vld [vmem:[%s1018_s23 + $0x1e8] sm:$0xff]  ;;  %v272_v59 = vld [vmem:[%s1018_s23 + $0x1f0] sm:$0xff] }
  0x21   : > { %877 = vmatmul.msk.f32.gmra.mxu2 %vm280_vm0, %v244_v10  ;;  %893 = vmatmul.msk.f32.gmra.mxu3 %vm280_vm0, %v260_v11  ;;  %v222_v52 = vld [vmem:[%s1018_s23 + $0x60] sm:$0xff]  ;;  %v223_v56 = vld [vmem:[%s1018_s23 + $0x68] sm:$0xff]  ;;  %v224_v60 = vld [vmem:[%s1018_s23 + $0x70] sm:$0xff] }
  0x22   : > { %845 = vmatmul.msk.f32.gmra.mxu0 %vm280_vm0, %v212_v12  ;;  %v238_v53 = vld [vmem:[%s1018_s23 + $0xe0] sm:$0xff]  ;;  %v239_v57 = vld [vmem:[%s1018_s23 + $0xe8] sm:$0xff]  ;;  %v240_v61 = vld [vmem:[%s1018_s23 + $0xf0] sm:$0xff] }
  0x23   : > { %861 = vmatmul.msk.f32.gmra.mxu1 %vm280_vm0, %v228_v13  ;;  %v257_v62 = vld [vmem:[%s1018_s23 + $0x178] sm:$0xff]  ;;  %v1151_v2 = vld [vmem:[%s1363_s2] ss:$0 sm:$0xff] }
  0x24   : > { %v273_v63 = vld [vmem:[%s1018_s23 + $0x1f8] sm:$0xff] }
  0x25   : > { %v225_v0 = vld [vmem:[%s1018_s23 + $0x78] sm:$0xff] }
  0x26   : > { %v241_v1 = vld [vmem:[%s1018_s23 + $0xf8] sm:$0xff] }
  0x29   : > { %878 = vmatmul.msk.f32.gmra.mxu2 %vm280_vm0, %v245_v14  ;;  %894 = vmatmul.msk.f32.gmra.mxu3 %vm280_vm0, %v261_v15 }
  0x2a   : > { %846 = vmatmul.msk.f32.gmra.mxu0 %vm280_vm0, %v213_v16 }
  0x2b   : > { %862 = vmatmul.msk.f32.gmra.mxu1 %vm280_vm0, %v229_v17 }
  0x31   : > { %879 = vmatmul.msk.f32.gmra.mxu2 %vm280_vm0, %v246_v18  ;;  %895 = vmatmul.msk.f32.gmra.mxu3 %vm280_vm0, %v262_v19 }
  0x32   : > { %847 = vmatmul.msk.f32.gmra.mxu0 %vm280_vm0, %v214_v20 }
  0x33   : > { %863 = vmatmul.msk.f32.gmra.mxu1 %vm280_vm0, %v230_v21 }
  0x39   : > { %880 = vmatmul.msk.f32.gmra.mxu2 %vm280_vm0, %v247_v22  ;;  %896 = vmatmul.msk.f32.gmra.mxu3 %vm280_vm0, %v263_v23 }
  0x3a   : > { %848 = vmatmul.msk.f32.gmra.mxu0 %vm280_vm0, %v215_v24 }
  0x3b   : > { %864 = vmatmul.msk.f32.gmra.mxu1 %vm280_vm0, %v231_v25 }
  0x41   : > { %881 = vmatmul.msk.f32.gmra.mxu2 %vm280_vm0, %v248_v26  ;;  %897 = vmatmul.msk.f32.gmra.mxu3 %vm280_vm0, %v264_v27 }
  0x42   : > { %849 = vmatmul.msk.f32.gmra.mxu0 %vm280_vm0, %v216_v28 }
  0x43   : > { %865 = vmatmul.msk.f32.gmra.mxu1 %vm280_vm0, %v232_v29 }
  0x49   : > { %882 = vmatmul.msk.f32.gmra.mxu2 %vm280_vm0, %v249_v30  ;;  %898 = vmatmul.msk.f32.gmra.mxu3 %vm280_vm0, %v265_v31 }
  0x4a   : > { %850 = vmatmul.msk.f32.gmra.mxu0 %vm280_vm0, %v217_v32 }
  0x4b   : > { %866 = vmatmul.msk.f32.gmra.mxu1 %vm280_vm0, %v233_v33 }
  0x51   : > { %883 = vmatmul.msk.f32.gmra.mxu2 %vm280_vm0, %v250_v34  ;;  %899 = vmatmul.msk.f32.gmra.mxu3 %vm280_vm0, %v266_v35 }
  0x52   : > { %851 = vmatmul.msk.f32.gmra.mxu0 %vm280_vm0, %v218_v36 }
  0x53   : > { %867 = vmatmul.msk.f32.gmra.mxu1 %vm280_vm0, %v234_v37 }
  0x59   : > { %884 = vmatmul.msk.f32.gmra.mxu2 %vm280_vm0, %v251_v38  ;;  %900 = vmatmul.msk.f32.gmra.mxu3 %vm280_vm0, %v267_v39 }
  0x5a   : > { %852 = vmatmul.msk.f32.gmra.mxu0 %vm280_vm0, %v219_v40 }
  0x5b   : > { %868 = vmatmul.msk.f32.gmra.mxu1 %vm280_vm0, %v235_v41 }
  0x61   : > { %885 = vmatmul.msk.f32.gmra.mxu2 %vm280_vm0, %v252_v42  ;;  %901 = vmatmul.msk.f32.gmra.mxu3 %vm280_vm0, %v268_v43 }
  0x62   : > { %853 = vmatmul.msk.f32.gmra.mxu0 %vm280_vm0, %v220_v44 }
  0x63   : > { %869 = vmatmul.msk.f32.gmra.mxu1 %vm280_vm0, %v236_v45 }
  0x69   : > { %886 = vmatmul.msk.f32.gmra.mxu2 %vm280_vm0, %v253_v46  ;;  %902 = vmatmul.msk.f32.gmra.mxu3 %vm280_vm0, %v269_v47 }
  0x6a   : > { %854 = vmatmul.msk.f32.gmra.mxu0 %vm280_vm0, %v221_v48 }
  0x6b   : > { %870 = vmatmul.msk.f32.gmra.mxu1 %vm280_vm0, %v237_v49 }
  0x71   : > { %887 = vmatmul.msk.f32.gmra.mxu2 %vm280_vm0, %v254_v50  ;;  %903 = vmatmul.msk.f32.gmra.mxu3 %vm280_vm0, %v270_v51 }
  0x72   : > { %855 = vmatmul.msk.f32.gmra.mxu0 %vm280_vm0, %v222_v52 }
  0x73   : > { %871 = vmatmul.msk.f32.gmra.mxu1 %vm280_vm0, %v238_v53 }
  0x79   : > { %888 = vmatmul.msk.f32.gmra.mxu2 %vm280_vm0, %v255_v54  ;;  %904 = vmatmul.msk.f32.gmra.mxu3 %vm280_vm0, %v271_v55 }
  0x7a   : > { %856 = vmatmul.msk.f32.gmra.mxu0 %vm280_vm0, %v223_v56 }
  0x7b   : > { %872 = vmatmul.msk.f32.gmra.mxu1 %vm280_vm0, %v239_v57 }
  0x81   : > { %889 = vmatmul.msk.f32.gmra.mxu2 %vm280_vm0, %v256_v58  ;;  %905 = vmatmul.msk.f32.gmra.mxu3 %vm280_vm0, %v272_v59 }
  0x82   : > { %857 = vmatmul.msk.f32.gmra.mxu0 %vm280_vm0, %v224_v60 }
  0x83   : > { %873 = vmatmul.msk.f32.gmra.mxu1 %vm280_vm0, %v240_v61 }
  0x89   : > { %890 = vmatmul.msk.f32.gmra.mxu2 %vm280_vm0, %v257_v62  ;;  %906 = vmatmul.msk.f32.gmra.mxu3 %vm280_vm0, %v273_v63 }
  0x8a   : > { %858 = vmatmul.msk.f32.gmra.mxu0 %vm280_vm0, %v225_v0 }
  0x8b   : > { %874 = vmatmul.msk.f32.gmra.mxu1 %vm280_vm0, %v241_v1 }
  0x8f   : > { %v490_v3 = vpop.f32.mrf.mxu0 }
  0x90   : > { %v538_v4 = vpop.f32.mrf.mxu1  ;;  %v491_v5 = vadd.f32 %v1151_v2, %v490_v3 }
  0x91   : > { %v539_v6 = vadd.f32 %v1151_v2, %v538_v4 }
  0x92   : > { %683 = vst.msk [vmem:[%s1158_s28] sm:$0xff] %vm682_vm1, %v491_v5 }
  0x93   : > { %699 = vst.msk [vmem:[%s1158_s28 + $0x80] sm:$0xff] %vm682_vm1, %v539_v6 }
  0x94   : > { %v586_v7 = vpop.f32.mrf.mxu2  ;;  %v634_v8 = vpop.f32.mrf.mxu3 }
  0x95   : > { %v587_v9 = vadd.f32 %v1151_v2, %v586_v7  ;;  %v635_v10 = vadd.f32 %v1151_v2, %v634_v8 }
  0x97   : > { %715 = vst.msk [vmem:[%s1158_s28 + $0x100] sm:$0xff] %vm682_vm1, %v587_v9  ;;  %v493_v11 = vpop.f32.mrf.mxu0 }
  0x98   : > { %v541_v12 = vpop.f32.mrf.mxu1  ;;  %731 = vst.msk [vmem:[%s1158_s28 + $0x180] sm:$0xff] %vm682_vm1, %v635_v10  ;;  %v494_v13 = vadd.f32 %v1151_v2, %v493_v11 }
  0x99   : > { %v542_v14 = vadd.f32 %v1151_v2, %v541_v12 }
  0x9a   : > { %684 = vst.msk [vmem:[%s1158_s28 + $0x8] sm:$0xff] %vm682_vm1, %v494_v13 }
  0x9b   : > { %700 = vst.msk [vmem:[%s1158_s28 + $0x88] sm:$0xff] %vm682_vm1, %v542_v14 }
  0x9c   : > { %v589_v15 = vpop.f32.mrf.mxu2  ;;  %v637_v16 = vpop.f32.mrf.mxu3 }
  0x9d   : > { %v590_v17 = vadd.f32 %v1151_v2, %v589_v15  ;;  %v638_v18 = vadd.f32 %v1151_v2, %v637_v16 }
  0x9f   : > { %716 = vst.msk [vmem:[%s1158_s28 + $0x108] sm:$0xff] %vm682_vm1, %v590_v17  ;;  %v496_v19 = vpop.f32.mrf.mxu0 }
  0xa0   : > { %v544_v20 = vpop.f32.mrf.mxu1  ;;  %732 = vst.msk [vmem:[%s1158_s28 + $0x188] sm:$0xff] %vm682_vm1, %v638_v18  ;;  %v497_v21 = vadd.f32 %v1151_v2, %v496_v19 }
  0xa1   : > { %v545_v22 = vadd.f32 %v1151_v2, %v544_v20 }
  0xa2   : > { %685 = vst.msk [vmem:[%s1158_s28 + $0x10] sm:$0xff] %vm682_vm1, %v497_v21 }
  0xa3   : > { %701 = vst.msk [vmem:[%s1158_s28 + $0x90] sm:$0xff] %vm682_vm1, %v545_v22 }
  0xa4   : > { %v592_v23 = vpop.f32.mrf.mxu2  ;;  %v640_v24 = vpop.f32.mrf.mxu3 }
  0xa5   : > { %v593_v25 = vadd.f32 %v1151_v2, %v592_v23  ;;  %v641_v26 = vadd.f32 %v1151_v2, %v640_v24 }
  0xa7   : > { %717 = vst.msk [vmem:[%s1158_s28 + $0x110] sm:$0xff] %vm682_vm1, %v593_v25  ;;  %v499_v27 = vpop.f32.mrf.mxu0 }
  0xa8   : > { %v547_v28 = vpop.f32.mrf.mxu1  ;;  %733 = vst.msk [vmem:[%s1158_s28 + $0x190] sm:$0xff] %vm682_vm1, %v641_v26  ;;  %v500_v29 = vadd.f32 %v1151_v2, %v499_v27 }
  0xa9   : > { %v548_v30 = vadd.f32 %v1151_v2, %v547_v28 }
  0xaa   : > { %686 = vst.msk [vmem:[%s1158_s28 + $0x18] sm:$0xff] %vm682_vm1, %v500_v29 }
  0xab   : > { %702 = vst.msk [vmem:[%s1158_s28 + $0x98] sm:$0xff] %vm682_vm1, %v548_v30 }
  0xac   : > { %v595_v31 = vpop.f32.mrf.mxu2  ;;  %v643_v32 = vpop.f32.mrf.mxu3 }
  0xad   : > { %v596_v33 = vadd.f32 %v1151_v2, %v595_v31  ;;  %v644_v34 = vadd.f32 %v1151_v2, %v643_v32 }
  0xaf   : > { %718 = vst.msk [vmem:[%s1158_s28 + $0x118] sm:$0xff] %vm682_vm1, %v596_v33  ;;  %v502_v35 = vpop.f32.mrf.mxu0 }
  0xb0   : > { %v550_v36 = vpop.f32.mrf.mxu1  ;;  %734 = vst.msk [vmem:[%s1158_s28 + $0x198] sm:$0xff] %vm682_vm1, %v644_v34  ;;  %v503_v37 = vadd.f32 %v1151_v2, %v502_v35 }
  0xb1   : > { %v551_v38 = vadd.f32 %v1151_v2, %v550_v36 }
  0xb2   : > { %687 = vst.msk [vmem:[%s1158_s28 + $0x20] sm:$0xff] %vm682_vm1, %v503_v37 }
  0xb3   : > { %703 = vst.msk [vmem:[%s1158_s28 + $0xa0] sm:$0xff] %vm682_vm1, %v551_v38 }
  0xb4   : > { %v598_v39 = vpop.f32.mrf.mxu2  ;;  %v646_v40 = vpop.f32.mrf.mxu3 }
  0xb5   : > { %v599_v41 = vadd.f32 %v1151_v2, %v598_v39  ;;  %v647_v42 = vadd.f32 %v1151_v2, %v646_v40 }
  0xb7   : > { %719 = vst.msk [vmem:[%s1158_s28 + $0x120] sm:$0xff] %vm682_vm1, %v599_v41  ;;  %v505_v43 = vpop.f32.mrf.mxu0 }
  0xb8   : > { %v553_v44 = vpop.f32.mrf.mxu1  ;;  %735 = vst.msk [vmem:[%s1158_s28 + $0x1a0] sm:$0xff] %vm682_vm1, %v647_v42  ;;  %v506_v45 = vadd.f32 %v1151_v2, %v505_v43 }
  0xb9   : > { %v554_v46 = vadd.f32 %v1151_v2, %v553_v44 }
  0xba   : > { %688 = vst.msk [vmem:[%s1158_s28 + $0x28] sm:$0xff] %vm682_vm1, %v506_v45 }
  0xbb   : > { %704 = vst.msk [vmem:[%s1158_s28 + $0xa8] sm:$0xff] %vm682_vm1, %v554_v46 }
  0xbc   : > { %v601_v47 = vpop.f32.mrf.mxu2  ;;  %v649_v48 = vpop.f32.mrf.mxu3 }
  0xbd   : > { %v602_v49 = vadd.f32 %v1151_v2, %v601_v47  ;;  %v650_v50 = vadd.f32 %v1151_v2, %v649_v48 }
  0xbf   : > { %720 = vst.msk [vmem:[%s1158_s28 + $0x128] sm:$0xff] %vm682_vm1, %v602_v49  ;;  %v508_v51 = vpop.f32.mrf.mxu0 }
  0xc0   : > { %v556_v52 = vpop.f32.mrf.mxu1  ;;  %736 = vst.msk [vmem:[%s1158_s28 + $0x1a8] sm:$0xff] %vm682_vm1, %v650_v50  ;;  %v509_v53 = vadd.f32 %v1151_v2, %v508_v51 }
  0xc1   : > { %v557_v54 = vadd.f32 %v1151_v2, %v556_v52 }
  0xc2   : > { %689 = vst.msk [vmem:[%s1158_s28 + $0x30] sm:$0xff] %vm682_vm1, %v509_v53 }
  0xc3   : > { %705 = vst.msk [vmem:[%s1158_s28 + $0xb0] sm:$0xff] %vm682_vm1, %v557_v54 }
  0xc4   : > { %v604_v55 = vpop.f32.mrf.mxu2  ;;  %v652_v56 = vpop.f32.mrf.mxu3 }
  0xc5   : > { %v605_v57 = vadd.f32 %v1151_v2, %v604_v55  ;;  %v653_v58 = vadd.f32 %v1151_v2, %v652_v56 }
  0xc7   : > { %721 = vst.msk [vmem:[%s1158_s28 + $0x130] sm:$0xff] %vm682_vm1, %v605_v57  ;;  %v511_v59 = vpop.f32.mrf.mxu0 }
  0xc8   : > { %v559_v60 = vpop.f32.mrf.mxu1  ;;  %737 = vst.msk [vmem:[%s1158_s28 + $0x1b0] sm:$0xff] %vm682_vm1, %v653_v58  ;;  %v512_v61 = vadd.f32 %v1151_v2, %v511_v59 }
  0xc9   : > { %v560_v62 = vadd.f32 %v1151_v2, %v559_v60 }
  0xca   : > { %690 = vst.msk [vmem:[%s1158_s28 + $0x38] sm:$0xff] %vm682_vm1, %v512_v61 }
  0xcb   : > { %706 = vst.msk [vmem:[%s1158_s28 + $0xb8] sm:$0xff] %vm682_vm1, %v560_v62 }
  0xcc   : > { %v607_v63 = vpop.f32.mrf.mxu2  ;;  %v655_v0 = vpop.f32.mrf.mxu3 }
  0xcd   : > { %v608_v1 = vadd.f32 %v1151_v2, %v607_v63  ;;  %v656_v3 = vadd.f32 %v1151_v2, %v655_v0 }
  0xcf   : > { %722 = vst.msk [vmem:[%s1158_s28 + $0x138] sm:$0xff] %vm682_vm1, %v608_v1  ;;  %v514_v4 = vpop.f32.mrf.mxu0 }
  0xd0   : > { %v562_v5 = vpop.f32.mrf.mxu1  ;;  %738 = vst.msk [vmem:[%s1158_s28 + $0x1b8] sm:$0xff] %vm682_vm1, %v656_v3  ;;  %v515_v6 = vadd.f32 %v1151_v2, %v514_v4 }
  0xd1   : > { %v563_v7 = vadd.f32 %v1151_v2, %v562_v5 }
  0xd2   : > { %691 = vst.msk [vmem:[%s1158_s28 + $0x40] sm:$0xff] %vm682_vm1, %v515_v6 }
  0xd3   : > { %707 = vst.msk [vmem:[%s1158_s28 + $0xc0] sm:$0xff] %vm682_vm1, %v563_v7 }
  0xd4   : > { %v610_v8 = vpop.f32.mrf.mxu2  ;;  %v658_v9 = vpop.f32.mrf.mxu3 }
  0xd5   : > { %v611_v10 = vadd.f32 %v1151_v2, %v610_v8  ;;  %v659_v11 = vadd.f32 %v1151_v2, %v658_v9 }
  0xd7   : > { %723 = vst.msk [vmem:[%s1158_s28 + $0x140] sm:$0xff] %vm682_vm1, %v611_v10  ;;  %v517_v12 = vpop.f32.mrf.mxu0 }
  0xd8   : > { %v565_v13 = vpop.f32.mrf.mxu1  ;;  %739 = vst.msk [vmem:[%s1158_s28 + $0x1c0] sm:$0xff] %vm682_vm1, %v659_v11  ;;  %v518_v14 = vadd.f32 %v1151_v2, %v517_v12 }
  0xd9   : > { %v566_v15 = vadd.f32 %v1151_v2, %v565_v13 }
  0xda   : > { %692 = vst.msk [vmem:[%s1158_s28 + $0x48] sm:$0xff] %vm682_vm1, %v518_v14 }
  0xdb   : > { %708 = vst.msk [vmem:[%s1158_s28 + $0xc8] sm:$0xff] %vm682_vm1, %v566_v15 }
  0xdc   : > { %v613_v16 = vpop.f32.mrf.mxu2  ;;  %v661_v17 = vpop.f32.mrf.mxu3 }
  0xdd   : > { %v614_v18 = vadd.f32 %v1151_v2, %v613_v16  ;;  %v662_v19 = vadd.f32 %v1151_v2, %v661_v17 }
  0xdf   : > { %724 = vst.msk [vmem:[%s1158_s28 + $0x148] sm:$0xff] %vm682_vm1, %v614_v18  ;;  %v520_v20 = vpop.f32.mrf.mxu0 }
  0xe0   : > { %v568_v21 = vpop.f32.mrf.mxu1  ;;  %740 = vst.msk [vmem:[%s1158_s28 + $0x1c8] sm:$0xff] %vm682_vm1, %v662_v19  ;;  %v521_v22 = vadd.f32 %v1151_v2, %v520_v20 }
  0xe1   : > { %v569_v23 = vadd.f32 %v1151_v2, %v568_v21 }
  0xe2   : > { %693 = vst.msk [vmem:[%s1158_s28 + $0x50] sm:$0xff] %vm682_vm1, %v521_v22 }
  0xe3   : > { %709 = vst.msk [vmem:[%s1158_s28 + $0xd0] sm:$0xff] %vm682_vm1, %v569_v23 }
  0xe4   : > { %v616_v24 = vpop.f32.mrf.mxu2  ;;  %v664_v25 = vpop.f32.mrf.mxu3 }
  0xe5   : > { %v617_v26 = vadd.f32 %v1151_v2, %v616_v24  ;;  %v665_v27 = vadd.f32 %v1151_v2, %v664_v25 }
  0xe7   : > { %725 = vst.msk [vmem:[%s1158_s28 + $0x150] sm:$0xff] %vm682_vm1, %v617_v26  ;;  %v523_v28 = vpop.f32.mrf.mxu0 }
  0xe8   : > { %v571_v29 = vpop.f32.mrf.mxu1  ;;  %741 = vst.msk [vmem:[%s1158_s28 + $0x1d0] sm:$0xff] %vm682_vm1, %v665_v27  ;;  %v524_v30 = vadd.f32 %v1151_v2, %v523_v28 }
  0xe9   : > { %v572_v31 = vadd.f32 %v1151_v2, %v571_v29 }
  0xea   : > { %694 = vst.msk [vmem:[%s1158_s28 + $0x58] sm:$0xff] %vm682_vm1, %v524_v30 }
  0xeb   : > { %710 = vst.msk [vmem:[%s1158_s28 + $0xd8] sm:$0xff] %vm682_vm1, %v572_v31 }
  0xec   : > { %v619_v32 = vpop.f32.mrf.mxu2  ;;  %v667_v33 = vpop.f32.mrf.mxu3 }
  0xed   : > { %v620_v34 = vadd.f32 %v1151_v2, %v619_v32  ;;  %v668_v35 = vadd.f32 %v1151_v2, %v667_v33 }
  0xef   : > { %726 = vst.msk [vmem:[%s1158_s28 + $0x158] sm:$0xff] %vm682_vm1, %v620_v34  ;;  %v526_v36 = vpop.f32.mrf.mxu0 }
  0xf0   : > { %v574_v37 = vpop.f32.mrf.mxu1  ;;  %742 = vst.msk [vmem:[%s1158_s28 + $0x1d8] sm:$0xff] %vm682_vm1, %v668_v35  ;;  %v527_v38 = vadd.f32 %v1151_v2, %v526_v36 }
  0xf1   : > { %v575_v39 = vadd.f32 %v1151_v2, %v574_v37 }
  0xf2   : > { %695 = vst.msk [vmem:[%s1158_s28 + $0x60] sm:$0xff] %vm682_vm1, %v527_v38 }
  0xf3   : > { %711 = vst.msk [vmem:[%s1158_s28 + $0xe0] sm:$0xff] %vm682_vm1, %v575_v39 }
  0xf4   : > { %v622_v40 = vpop.f32.mrf.mxu2  ;;  %v670_v41 = vpop.f32.mrf.mxu3 }
  0xf5   : > { %v623_v42 = vadd.f32 %v1151_v2, %v622_v40  ;;  %v671_v43 = vadd.f32 %v1151_v2, %v670_v41 }
  0xf7   : > { %727 = vst.msk [vmem:[%s1158_s28 + $0x160] sm:$0xff] %vm682_vm1, %v623_v42  ;;  %v529_v44 = vpop.f32.mrf.mxu0 }
  0xf8   : > { %v577_v45 = vpop.f32.mrf.mxu1  ;;  %743 = vst.msk [vmem:[%s1158_s28 + $0x1e0] sm:$0xff] %vm682_vm1, %v671_v43  ;;  %v530_v46 = vadd.f32 %v1151_v2, %v529_v44 }
  0xf9   : > { %v578_v47 = vadd.f32 %v1151_v2, %v577_v45 }
  0xfa   : > { %696 = vst.msk [vmem:[%s1158_s28 + $0x68] sm:$0xff] %vm682_vm1, %v530_v46 }
  0xfb   : > { %712 = vst.msk [vmem:[%s1158_s28 + $0xe8] sm:$0xff] %vm682_vm1, %v578_v47 }
  0xfc   : > { %v625_v48 = vpop.f32.mrf.mxu2  ;;  %v673_v49 = vpop.f32.mrf.mxu3 }
  0xfd   : > { %v626_v50 = vadd.f32 %v1151_v2, %v625_v48  ;;  %v674_v51 = vadd.f32 %v1151_v2, %v673_v49 }
  0xff   : > { %728 = vst.msk [vmem:[%s1158_s28 + $0x168] sm:$0xff] %vm682_vm1, %v626_v50  ;;  %v532_v52 = vpop.f32.mrf.mxu0 }
 0x100   : > { %v580_v53 = vpop.f32.mrf.mxu1  ;;  %744 = vst.msk [vmem:[%s1158_s28 + $0x1e8] sm:$0xff] %vm682_vm1, %v674_v51  ;;  %v533_v54 = vadd.f32 %v1151_v2, %v532_v52 }
 0x101   : > { %v581_v55 = vadd.f32 %v1151_v2, %v580_v53 }
 0x102   : > { %697 = vst.msk [vmem:[%s1158_s28 + $0x70] sm:$0xff] %vm682_vm1, %v533_v54 }
 0x103   : > { %713 = vst.msk [vmem:[%s1158_s28 + $0xf0] sm:$0xff] %vm682_vm1, %v581_v55 }
 0x104   : > { %v628_v56 = vpop.f32.mrf.mxu2  ;;  %v676_v57 = vpop.f32.mrf.mxu3 }
 0x105   : > { %v629_v58 = vadd.f32 %v1151_v2, %v628_v56  ;;  %v677_v59 = vadd.f32 %v1151_v2, %v676_v57 }
 0x107   : > { %729 = vst.msk [vmem:[%s1158_s28 + $0x170] sm:$0xff] %vm682_vm1, %v629_v58  ;;  %v535_v60 = vpop.f32.mrf.mxu0 }
 0x108   : > { %v583_v61 = vpop.f32.mrf.mxu1  ;;  %745 = vst.msk [vmem:[%s1158_s28 + $0x1f0] sm:$0xff] %vm682_vm1, %v677_v59  ;;  %v536_v62 = vadd.f32 %v1151_v2, %v535_v60 }
 0x109   : > { %v584_v63 = vadd.f32 %v1151_v2, %v583_v61 }
 0x10a   : > { %698 = vst.msk [vmem:[%s1158_s28 + $0x78] sm:$0xff] %vm682_vm1, %v536_v62 }
 0x10b   : > { %714 = vst.msk [vmem:[%s1158_s28 + $0xf8] sm:$0xff] %vm682_vm1, %v584_v63 }
 0x10c   : > { %v631_v0 = vpop.f32.mrf.mxu2  ;;  %v679_v1 = vpop.f32.mrf.mxu3 }
 0x10d   : > { %v632_v3 = vadd.f32 %v1151_v2, %v631_v0  ;;  %v680_v4 = vadd.f32 %v1151_v2, %v679_v1 }
 0x10f   : > { %730 = vst.msk [vmem:[%s1158_s28 + $0x178] sm:$0xff] %vm682_vm1, %v632_v3 }
 0x110   : > { %746 = vst.msk [vmem:[%s1158_s28 + $0x1f8] sm:$0xff] %vm682_vm1, %v680_v4 }
 0x111 PF: > { %s13_s14 = sadd.s32 1, %s964_s14   ;;  %s1365_s12 = smov %s960_s13 }
 0x112   : > { %p10_p5 = scmp.ge.s32.totalorder %s13_s14, 4   ;;  %s1366_s13 = smov %s1368_s15 }
 0x114   :  { %12 = sbr.rel (!%p10_p5) target bundleno = 2 (0x2), region = 62 }

// kernel: tpu_custom_call.1
= control target key start
LH: loop header
LB: loop body
LE: loop exit
PB: predicated region body
PF: predicated region fallthrough
CT: control target
= control target key end

     0   :  { %s986_s12 = smov 0   ;;  %s988_s13 = smov 0   ;;  %s1361_s0 = inlined_call_operand.vmem [shape: f32[2,512,16], index: 0, kind: input, shape index: {}]   ;;  %s1362_s1 = inlined_call_operand.vmem [shape: f32[16,32], index: 1, kind: input, shape index: {}]   ;;  %s1363_s2 = inlined_call_operand.vmem [shape: f32[1,32], index: 2, kind: input, shape index: {}]   ;;  %s1364_s3 = inlined_call_operand.vmem [shape: f32[2,512,32], index: 3, kind: output, shape index: {}]  }
   0x1   :  { %s990_s14 = smov 0  }
   0x2 LB: > { %s25_s15 = sadd.s32 1, %s960_s13  ;;  %p838_p0 = scmp.ge.s32.totalorder %s964_s14, 1  ;;  %s964_s14 = sphi %s990_s14, %s13_s14   ;;  %s960_s13 = sphi %s988_s13, %s1366_s13   ;;  %s956_s12 = sphi %s986_s12, %s1365_s12  }
   0x3   : > { %p27_p1 = scmp.ge.s32.totalorder %s25_s15, 2  ;;  %p158_p2 = scmp.lt.s32.totalorder %s964_s14, 3 }
   0x5   : > { %s1368_s15 = smov (%p27_p1, %s25_s15), 0  ;;  %p159_p3 = pnand %p838_p0, %p158_p2 }
   0x6   : > { %p191_p4 = scmp.lt.s32.totalorder (!%p159_p3), %s956_s12, 1 }
   0x7   : > { %162 = sbr.rel (%p159_p3) target bundleno = 273 (0x111), region = 32 }
   0xc   : > { %v275_v0 = vld [vmem:[%s1362_s1 + $0x8] sm:$0xff]  ;;  %v274_v1 = vld [vmem:[%s1362_s1] sm:$0xff]  ;;  %s1370_s12 = smov (!%p191_p4, %s956_s12), 1  ;;  %vm280_vm0 = vcmask 130048   ;;  %vm682_vm1 = vcmask 261120  }
   0xd   : > { %912 = vmatpush.msra.mxu2 %v275_v0  ;;  %913 = vmatpush.msra.mxu3 %v275_v0  ;;  %s909_s20 = sshll.u32 %s1370_s12, 9 }
   0xe   : > { %487 = vmatpush.msra.mxu0 %v275_v0  ;;  %911 = vmatpush.msra.mxu1 %v275_v0  ;;  %s1018_s23 = scalar_lea.vmem %s1361_s0, %s909_s20  ;;  %s1158_s28 = scalar_lea.vmem %s1364_s3, %s909_s20 }
   0xf   : > { %915 = vmatpush.msra.mxu2 %v274_v1  ;;  %916 = vmatpush.msra.mxu3 %v274_v1  ;;  %v242_v2 = vld [vmem:[%s1018_s23 + $0x100] sm:$0xff]  ;;  %v243_v6 = vld [vmem:[%s1018_s23 + $0x108] sm:$0xff]  ;;  %v244_v10 = vld [vmem:[%s1018_s23 + $0x110] sm:$0xff] }
  0x10   : > { %488 = vmatpush.msra.mxu0 %v274_v1  ;;  %914 = vmatpush.msra.mxu1 %v274_v1  ;;  %v258_v3 = vld [vmem:[%s1018_s23 + $0x180] sm:$0xff]  ;;  %v259_v7 = vld [vmem:[%s1018_s23 + $0x188] sm:$0xff]  ;;  %v260_v11 = vld [vmem:[%s1018_s23 + $0x190] sm:$0xff] }
  0x11   : > { %v210_v4 = vld [vmem:[%s1018_s23] sm:$0xff]  ;;  %875 = vmatmul.msk.f32.vlgmr.msra.gmra.mxu2 %vm280_vm0, %v242_v2  ;;  %891 = vmatmul.msk.f32.vlgmr.msra.gmra.mxu3 %vm280_vm0, %v258_v3  ;;  %v211_v8 = vld [vmem:[%s1018_s23 + $0x8] sm:$0xff]  ;;  %v212_v12 = vld [vmem:[%s1018_s23 + $0x10] sm:$0xff] }
  0x12   : > { %v226_v5 = vld [vmem:[%s1018_s23 + $0x80] sm:$0xff]  ;;  %843 = vmatmul.msk.f32.vlgmr.msra.gmra.mxu0 %vm280_vm0, %v210_v4  ;;  %v227_v9 = vld [vmem:[%s1018_s23 + $0x88] sm:$0xff]  ;;  %v228_v13 = vld [vmem:[%s1018_s23 + $0x90] sm:$0xff] }
  0x13   : > { %859 = vmatmul.msk.f32.vlgmr.msra.gmra.mxu1 %vm280_vm0, %v226_v5  ;;  %v245_v14 = vld [vmem:[%s1018_s23 + $0x118] sm:$0xff]  ;;  %v246_v18 = vld [vmem:[%s1018_s23 + $0x120] sm:$0xff]  ;;  %v247_v22 = vld [vmem:[%s1018_s23 + $0x128] sm:$0xff] }
  0x14   : > { %v261_v15 = vld [vmem:[%s1018_s23 + $0x198] sm:$0xff]  ;;  %v262_v19 = vld [vmem:[%s1018_s23 + $0x1a0] sm:$0xff]  ;;  %v263_v23 = vld [vmem:[%s1018_s23 + $0x1a8] sm:$0xff] }
  0x15   : > { %v213_v16 = vld [vmem:[%s1018_s23 + $0x18] sm:$0xff]  ;;  %v214_v20 = vld [vmem:[%s1018_s23 + $0x20] sm:$0xff]  ;;  %v215_v24 = vld [vmem:[%s1018_s23 + $0x28] sm:$0xff] }
  0x16   : > { %v229_v17 = vld [vmem:[%s1018_s23 + $0x98] sm:$0xff]  ;;  %v230_v21 = vld [vmem:[%s1018_s23 + $0xa0] sm:$0xff]  ;;  %v231_v25 = vld [vmem:[%s1018_s23 + $0xa8] sm:$0xff] }
  0x17   : > { %v248_v26 = vld [vmem:[%s1018_s23 + $0x130] sm:$0xff]  ;;  %v249_v30 = vld [vmem:[%s1018_s23 + $0x138] sm:$0xff]  ;;  %v250_v34 = vld [vmem:[%s1018_s23 + $0x140] sm:$0xff] }
  0x18   : > { %v264_v27 = vld [vmem:[%s1018_s23 + $0x1b0] sm:$0xff]  ;;  %v265_v31 = vld [vmem:[%s1018_s23 + $0x1b8] sm:$0xff]  ;;  %v266_v35 = vld [vmem:[%s1018_s23 + $0x1c0] sm:$0xff] }
  0x19   : > { %876 = vmatmul.msk.f32.gmra.mxu2 %vm280_vm0, %v243_v6  ;;  %892 = vmatmul.msk.f32.gmra.mxu3 %vm280_vm0, %v259_v7  ;;  %v216_v28 = vld [vmem:[%s1018_s23 + $0x30] sm:$0xff]  ;;  %v217_v32 = vld [vmem:[%s1018_s23 + $0x38] sm:$0xff]  ;;  %v218_v36 = vld [vmem:[%s1018_s23 + $0x40] sm:$0xff] }
  0x1a   : > { %844 = vmatmul.msk.f32.gmra.mxu0 %vm280_vm0, %v211_v8  ;;  %v232_v29 = vld [vmem:[%s1018_s23 + $0xb0] sm:$0xff]  ;;  %v233_v33 = vld [vmem:[%s1018_s23 + $0xb8] sm:$0xff]  ;;  %v234_v37 = vld [vmem:[%s1018_s23 + $0xc0] sm:$0xff] }
  0x1b   : > { %860 = vmatmul.msk.f32.gmra.mxu1 %vm280_vm0, %v227_v9  ;;  %v251_v38 = vld [vmem:[%s1018_s23 + $0x148] sm:$0xff]  ;;  %v252_v42 = vld [vmem:[%s1018_s23 + $0x150] sm:$0xff]  ;;  %v253_v46 = vld [vmem:[%s1018_s23 + $0x158] sm:$0xff] }
  0x1c   : > { %v267_v39 = vld [vmem:[%s1018_s23 + $0x1c8] sm:$0xff]  ;;  %v268_v43 = vld [vmem:[%s1018_s23 + $0x1d0] sm:$0xff]  ;;  %v269_v47 = vld [vmem:[%s1018_s23 + $0x1d8] sm:$0xff] }
  0x1d   : > { %v219_v40 = vld [vmem:[%s1018_s23 + $0x48] sm:$0xff]  ;;  %v220_v44 = vld [vmem:[%s1018_s23 + $0x50] sm:$0xff]  ;;  %v221_v48 = vld [vmem:[%s1018_s23 + $0x58] sm:$0xff] }
  0x1e   : > { %v235_v41 = vld [vmem:[%s1018_s23 + $0xc8] sm:$0xff]  ;;  %v236_v45 = vld [vmem:[%s1018_s23 + $0xd0] sm:$0xff]  ;;  %v237_v49 = vld [vmem:[%s1018_s23 + $0xd8] sm:$0xff] }
  0x1f   : > { %v254_v50 = vld [vmem:[%s1018_s23 + $0x160] sm:$0xff]  ;;  %v255_v54 = vld [vmem:[%s1018_s23 + $0x168] sm:$0xff]  ;;  %v256_v58 = vld [vmem:[%s1018_s23 + $0x170] sm:$0xff] }
  0x20   : > { %v270_v51 = vld [vmem:[%s1018_s23 + $0x1e0] sm:$0xff]  ;;  %v271_v55 = vld [vmem:[%s1018_s23 + $0x1e8] sm:$0xff]  ;;  %v272_v59 = vld [vmem:[%s1018_s23 + $0x1f0] sm:$0xff] }
  0x21   : > { %877 = vmatmul.msk.f32.gmra.mxu2 %vm280_vm0, %v244_v10  ;;  %893 = vmatmul.msk.f32.gmra.mxu3 %vm280_vm0, %v260_v11  ;;  %v222_v52 = vld [vmem:[%s1018_s23 + $0x60] sm:$0xff]  ;;  %v223_v56 = vld [vmem:[%s1018_s23 + $0x68] sm:$0xff]  ;;  %v224_v60 = vld [vmem:[%s1018_s23 + $0x70] sm:$0xff] }
  0x22   : > { %845 = vmatmul.msk.f32.gmra.mxu0 %vm280_vm0, %v212_v12  ;;  %v238_v53 = vld [vmem:[%s1018_s23 + $0xe0] sm:$0xff]  ;;  %v239_v57 = vld [vmem:[%s1018_s23 + $0xe8] sm:$0xff]  ;;  %v240_v61 = vld [vmem:[%s1018_s23 + $0xf0] sm:$0xff] }
  0x23   : > { %861 = vmatmul.msk.f32.gmra.mxu1 %vm280_vm0, %v228_v13  ;;  %v257_v62 = vld [vmem:[%s1018_s23 + $0x178] sm:$0xff]  ;;  %v1151_v2 = vld [vmem:[%s1363_s2] ss:$0 sm:$0xff] }
  0x24   : > { %v273_v63 = vld [vmem:[%s1018_s23 + $0x1f8] sm:$0xff] }
  0x25   : > { %v225_v0 = vld [vmem:[%s1018_s23 + $0x78] sm:$0xff] }
  0x26   : > { %v241_v1 = vld [vmem:[%s1018_s23 + $0xf8] sm:$0xff] }
  0x29   : > { %878 = vmatmul.msk.f32.gmra.mxu2 %vm280_vm0, %v245_v14  ;;  %894 = vmatmul.msk.f32.gmra.mxu3 %vm280_vm0, %v261_v15 }
  0x2a   : > { %846 = vmatmul.msk.f32.gmra.mxu0 %vm280_vm0, %v213_v16 }
  0x2b   : > { %862 = vmatmul.msk.f32.gmra.mxu1 %vm280_vm0, %v229_v17 }
  0x31   : > { %879 = vmatmul.msk.f32.gmra.mxu2 %vm280_vm0, %v246_v18  ;;  %895 = vmatmul.msk.f32.gmra.mxu3 %vm280_vm0, %v262_v19 }
  0x32   : > { %847 = vmatmul.msk.f32.gmra.mxu0 %vm280_vm0, %v214_v20 }
  0x33   : > { %863 = vmatmul.msk.f32.gmra.mxu1 %vm280_vm0, %v230_v21 }
  0x39   : > { %880 = vmatmul.msk.f32.gmra.mxu2 %vm280_vm0, %v247_v22  ;;  %896 = vmatmul.msk.f32.gmra.mxu3 %vm280_vm0, %v263_v23 }
  0x3a   : > { %848 = vmatmul.msk.f32.gmra.mxu0 %vm280_vm0, %v215_v24 }
  0x3b   : > { %864 = vmatmul.msk.f32.gmra.mxu1 %vm280_vm0, %v231_v25 }
  0x41   : > { %881 = vmatmul.msk.f32.gmra.mxu2 %vm280_vm0, %v248_v26  ;;  %897 = vmatmul.msk.f32.gmra.mxu3 %vm280_vm0, %v264_v27 }
  0x42   : > { %849 = vmatmul.msk.f32.gmra.mxu0 %vm280_vm0, %v216_v28 }
  0x43   : > { %865 = vmatmul.msk.f32.gmra.mxu1 %vm280_vm0, %v232_v29 }
  0x49   : > { %882 = vmatmul.msk.f32.gmra.mxu2 %vm280_vm0, %v249_v30  ;;  %898 = vmatmul.msk.f32.gmra.mxu3 %vm280_vm0, %v265_v31 }
  0x4a   : > { %850 = vmatmul.msk.f32.gmra.mxu0 %vm280_vm0, %v217_v32 }
  0x4b   : > { %866 = vmatmul.msk.f32.gmra.mxu1 %vm280_vm0, %v233_v33 }
  0x51   : > { %883 = vmatmul.msk.f32.gmra.mxu2 %vm280_vm0, %v250_v34  ;;  %899 = vmatmul.msk.f32.gmra.mxu3 %vm280_vm0, %v266_v35 }
  0x52   : > { %851 = vmatmul.msk.f32.gmra.mxu0 %vm280_vm0, %v218_v36 }
  0x53   : > { %867 = vmatmul.msk.f32.gmra.mxu1 %vm280_vm0, %v234_v37 }
  0x59   : > { %884 = vmatmul.msk.f32.gmra.mxu2 %vm280_vm0, %v251_v38  ;;  %900 = vmatmul.msk.f32.gmra.mxu3 %vm280_vm0, %v267_v39 }
  0x5a   : > { %852 = vmatmul.msk.f32.gmra.mxu0 %vm280_vm0, %v219_v40 }
  0x5b   : > { %868 = vmatmul.msk.f32.gmra.mxu1 %vm280_vm0, %v235_v41 }
  0x61   : > { %885 = vmatmul.msk.f32.gmra.mxu2 %vm280_vm0, %v252_v42  ;;  %901 = vmatmul.msk.f32.gmra.mxu3 %vm280_vm0, %v268_v43 }
  0x62   : > { %853 = vmatmul.msk.f32.gmra.mxu0 %vm280_vm0, %v220_v44 }
  0x63   : > { %869 = vmatmul.msk.f32.gmra.mxu1 %vm280_vm0, %v236_v45 }
  0x69   : > { %886 = vmatmul.msk.f32.gmra.mxu2 %vm280_vm0, %v253_v46  ;;  %902 = vmatmul.msk.f32.gmra.mxu3 %vm280_vm0, %v269_v47 }
  0x6a   : > { %854 = vmatmul.msk.f32.gmra.mxu0 %vm280_vm0, %v221_v48 }
  0x6b   : > { %870 = vmatmul.msk.f32.gmra.mxu1 %vm280_vm0, %v237_v49 }
  0x71   : > { %887 = vmatmul.msk.f32.gmra.mxu2 %vm280_vm0, %v254_v50  ;;  %903 = vmatmul.msk.f32.gmra.mxu3 %vm280_vm0, %v270_v51 }
  0x72   : > { %855 = vmatmul.msk.f32.gmra.mxu0 %vm280_vm0, %v222_v52 }
  0x73   : > { %871 = vmatmul.msk.f32.gmra.mxu1 %vm280_vm0, %v238_v53 }
  0x79   : > { %888 = vmatmul.msk.f32.gmra.mxu2 %vm280_vm0, %v255_v54  ;;  %904 = vmatmul.msk.f32.gmra.mxu3 %vm280_vm0, %v271_v55 }
  0x7a   : > { %856 = vmatmul.msk.f32.gmra.mxu0 %vm280_vm0, %v223_v56 }
  0x7b   : > { %872 = vmatmul.msk.f32.gmra.mxu1 %vm280_vm0, %v239_v57 }
  0x81   : > { %889 = vmatmul.msk.f32.gmra.mxu2 %vm280_vm0, %v256_v58  ;;  %905 = vmatmul.msk.f32.gmra.mxu3 %vm280_vm0, %v272_v59 }
  0x82   : > { %857 = vmatmul.msk.f32.gmra.mxu0 %vm280_vm0, %v224_v60 }
  0x83   : > { %873 = vmatmul.msk.f32.gmra.mxu1 %vm280_vm0, %v240_v61 }
  0x89   : > { %890 = vmatmul.msk.f32.gmra.mxu2 %vm280_vm0, %v257_v62  ;;  %906 = vmatmul.msk.f32.gmra.mxu3 %vm280_vm0, %v273_v63 }
  0x8a   : > { %858 = vmatmul.msk.f32.gmra.mxu0 %vm280_vm0, %v225_v0 }
  0x8b   : > { %874 = vmatmul.msk.f32.gmra.mxu1 %vm280_vm0, %v241_v1 }
  0x8f   : > { %v490_v3 = vpop.f32.mrf.mxu0 }
  0x90   : > { %v538_v4 = vpop.f32.mrf.mxu1  ;;  %v491_v5 = vadd.f32 %v1151_v2, %v490_v3 }
  0x91   : > { %v539_v6 = vadd.f32 %v1151_v2, %v538_v4 }
  0x92   : > { %683 = vst.msk [vmem:[%s1158_s28] sm:$0xff] %vm682_vm1, %v491_v5 }
  0x93   : > { %699 = vst.msk [vmem:[%s1158_s28 + $0x80] sm:$0xff] %vm682_vm1, %v539_v6 }
  0x94   : > { %v586_v7 = vpop.f32.mrf.mxu2  ;;  %v634_v8 = vpop.f32.mrf.mxu3 }
  0x95   : > { %v587_v9 = vadd.f32 %v1151_v2, %v586_v7  ;;  %v635_v10 = vadd.f32 %v1151_v2, %v634_v8 }
  0x97   : > { %715 = vst.msk [vmem:[%s1158_s28 + $0x100] sm:$0xff] %vm682_vm1, %v587_v9  ;;  %v493_v11 = vpop.f32.mrf.mxu0 }
  0x98   : > { %v541_v12 = vpop.f32.mrf.mxu1  ;;  %731 = vst.msk [vmem:[%s1158_s28 + $0x180] sm:$0xff] %vm682_vm1, %v635_v10  ;;  %v494_v13 = vadd.f32 %v1151_v2, %v493_v11 }
  0x99   : > { %v542_v14 = vadd.f32 %v1151_v2, %v541_v12 }
  0x9a   : > { %684 = vst.msk [vmem:[%s1158_s28 + $0x8] sm:$0xff] %vm682_vm1, %v494_v13 }
  0x9b   : > { %700 = vst.msk [vmem:[%s1158_s28 + $0x88] sm:$0xff] %vm682_vm1, %v542_v14 }
  0x9c   : > { %v589_v15 = vpop.f32.mrf.mxu2  ;;  %v637_v16 = vpop.f32.mrf.mxu3 }
  0x9d   : > { %v590_v17 = vadd.f32 %v1151_v2, %v589_v15  ;;  %v638_v18 = vadd.f32 %v1151_v2, %v637_v16 }
  0x9f   : > { %716 = vst.msk [vmem:[%s1158_s28 + $0x108] sm:$0xff] %vm682_vm1, %v590_v17  ;;  %v496_v19 = vpop.f32.mrf.mxu0 }
  0xa0   : > { %v544_v20 = vpop.f32.mrf.mxu1  ;;  %732 = vst.msk [vmem:[%s1158_s28 + $0x188] sm:$0xff] %vm682_vm1, %v638_v18  ;;  %v497_v21 = vadd.f32 %v1151_v2, %v496_v19 }
  0xa1   : > { %v545_v22 = vadd.f32 %v1151_v2, %v544_v20 }
  0xa2   : > { %685 = vst.msk [vmem:[%s1158_s28 + $0x10] sm:$0xff] %vm682_vm1, %v497_v21 }
  0xa3   : > { %701 = vst.msk [vmem:[%s1158_s28 + $0x90] sm:$0xff] %vm682_vm1, %v545_v22 }
  0xa4   : > { %v592_v23 = vpop.f32.mrf.mxu2  ;;  %v640_v24 = vpop.f32.mrf.mxu3 }
  0xa5   : > { %v593_v25 = vadd.f32 %v1151_v2, %v592_v23  ;;  %v641_v26 = vadd.f32 %v1151_v2, %v640_v24 }
  0xa7   : > { %717 = vst.msk [vmem:[%s1158_s28 + $0x110] sm:$0xff] %vm682_vm1, %v593_v25  ;;  %v499_v27 = vpop.f32.mrf.mxu0 }
  0xa8   : > { %v547_v28 = vpop.f32.mrf.mxu1  ;;  %733 = vst.msk [vmem:[%s1158_s28 + $0x190] sm:$0xff] %vm682_vm1, %v641_v26  ;;  %v500_v29 = vadd.f32 %v1151_v2, %v499_v27 }
  0xa9   : > { %v548_v30 = vadd.f32 %v1151_v2, %v547_v28 }
  0xaa   : > { %686 = vst.msk [vmem:[%s1158_s28 + $0x18] sm:$0xff] %vm682_vm1, %v500_v29 }
  0xab   : > { %702 = vst.msk [vmem:[%s1158_s28 + $0x98] sm:$0xff] %vm682_vm1, %v548_v30 }
  0xac   : > { %v595_v31 = vpop.f32.mrf.mxu2  ;;  %v643_v32 = vpop.f32.mrf.mxu3 }
  0xad   : > { %v596_v33 = vadd.f32 %v1151_v2, %v595_v31  ;;  %v644_v34 = vadd.f32 %v1151_v2, %v643_v32 }
  0xaf   : > { %718 = vst.msk [vmem:[%s1158_s28 + $0x118] sm:$0xff] %vm682_vm1, %v596_v33  ;;  %v502_v35 = vpop.f32.mrf.mxu0 }
  0xb0   : > { %v550_v36 = vpop.f32.mrf.mxu1  ;;  %734 = vst.msk [vmem:[%s1158_s28 + $0x198] sm:$0xff] %vm682_vm1, %v644_v34  ;;  %v503_v37 = vadd.f32 %v1151_v2, %v502_v35 }
  0xb1   : > { %v551_v38 = vadd.f32 %v1151_v2, %v550_v36 }
  0xb2   : > { %687 = vst.msk [vmem:[%s1158_s28 + $0x20] sm:$0xff] %vm682_vm1, %v503_v37 }
  0xb3   : > { %703 = vst.msk [vmem:[%s1158_s28 + $0xa0] sm:$0xff] %vm682_vm1, %v551_v38 }
  0xb4   : > { %v598_v39 = vpop.f32.mrf.mxu2  ;;  %v646_v40 = vpop.f32.mrf.mxu3 }
  0xb5   : > { %v599_v41 = vadd.f32 %v1151_v2, %v598_v39  ;;  %v647_v42 = vadd.f32 %v1151_v2, %v646_v40 }
  0xb7   : > { %719 = vst.msk [vmem:[%s1158_s28 + $0x120] sm:$0xff] %vm682_vm1, %v599_v41  ;;  %v505_v43 = vpop.f32.mrf.mxu0 }
  0xb8   : > { %v553_v44 = vpop.f32.mrf.mxu1  ;;  %735 = vst.msk [vmem:[%s1158_s28 + $0x1a0] sm:$0xff] %vm682_vm1, %v647_v42  ;;  %v506_v45 = vadd.f32 %v1151_v2, %v505_v43 }
  0xb9   : > { %v554_v46 = vadd.f32 %v1151_v2, %v553_v44 }
  0xba   : > { %688 = vst.msk [vmem:[%s1158_s28 + $0x28] sm:$0xff] %vm682_vm1, %v506_v45 }
  0xbb   : > { %704 = vst.msk [vmem:[%s1158_s28 + $0xa8] sm:$0xff] %vm682_vm1, %v554_v46 }
  0xbc   : > { %v601_v47 = vpop.f32.mrf.mxu2  ;;  %v649_v48 = vpop.f32.mrf.mxu3 }
  0xbd   : > { %v602_v49 = vadd.f32 %v1151_v2, %v601_v47  ;;  %v650_v50 = vadd.f32 %v1151_v2, %v649_v48 }
  0xbf   : > { %720 = vst.msk [vmem:[%s1158_s28 + $0x128] sm:$0xff] %vm682_vm1, %v602_v49  ;;  %v508_v51 = vpop.f32.mrf.mxu0 }
  0xc0   : > { %v556_v52 = vpop.f32.mrf.mxu1  ;;  %736 = vst.msk [vmem:[%s1158_s28 + $0x1a8] sm:$0xff] %vm682_vm1, %v650_v50  ;;  %v509_v53 = vadd.f32 %v1151_v2, %v508_v51 }
  0xc1   : > { %v557_v54 = vadd.f32 %v1151_v2, %v556_v52 }
  0xc2   : > { %689 = vst.msk [vmem:[%s1158_s28 + $0x30] sm:$0xff] %vm682_vm1, %v509_v53 }
  0xc3   : > { %705 = vst.msk [vmem:[%s1158_s28 + $0xb0] sm:$0xff] %vm682_vm1, %v557_v54 }
  0xc4   : > { %v604_v55 = vpop.f32.mrf.mxu2  ;;  %v652_v56 = vpop.f32.mrf.mxu3 }
  0xc5   : > { %v605_v57 = vadd.f32 %v1151_v2, %v604_v55  ;;  %v653_v58 = vadd.f32 %v1151_v2, %v652_v56 }
  0xc7   : > { %721 = vst.msk [vmem:[%s1158_s28 + $0x130] sm:$0xff] %vm682_vm1, %v605_v57  ;;  %v511_v59 = vpop.f32.mrf.mxu0 }
  0xc8   : > { %v559_v60 = vpop.f32.mrf.mxu1  ;;  %737 = vst.msk [vmem:[%s1158_s28 + $0x1b0] sm:$0xff] %vm682_vm1, %v653_v58  ;;  %v512_v61 = vadd.f32 %v1151_v2, %v511_v59 }
  0xc9   : > { %v560_v62 = vadd.f32 %v1151_v2, %v559_v60 }
  0xca   : > { %690 = vst.msk [vmem:[%s1158_s28 + $0x38] sm:$0xff] %vm682_vm1, %v512_v61 }
  0xcb   : > { %706 = vst.msk [vmem:[%s1158_s28 + $0xb8] sm:$0xff] %vm682_vm1, %v560_v62 }
  0xcc   : > { %v607_v63 = vpop.f32.mrf.mxu2  ;;  %v655_v0 = vpop.f32.mrf.mxu3 }
  0xcd   : > { %v608_v1 = vadd.f32 %v1151_v2, %v607_v63  ;;  %v656_v3 = vadd.f32 %v1151_v2, %v655_v0 }
  0xcf   : > { %722 = vst.msk [vmem:[%s1158_s28 + $0x138] sm:$0xff] %vm682_vm1, %v608_v1  ;;  %v514_v4 = vpop.f32.mrf.mxu0 }
  0xd0   : > { %v562_v5 = vpop.f32.mrf.mxu1  ;;  %738 = vst.msk [vmem:[%s1158_s28 + $0x1b8] sm:$0xff] %vm682_vm1, %v656_v3  ;;  %v515_v6 = vadd.f32 %v1151_v2, %v514_v4 }
  0xd1   : > { %v563_v7 = vadd.f32 %v1151_v2, %v562_v5 }
  0xd2   : > { %691 = vst.msk [vmem:[%s1158_s28 + $0x40] sm:$0xff] %vm682_vm1, %v515_v6 }
  0xd3   : > { %707 = vst.msk [vmem:[%s1158_s28 + $0xc0] sm:$0xff] %vm682_vm1, %v563_v7 }
  0xd4   : > { %v610_v8 = vpop.f32.mrf.mxu2  ;;  %v658_v9 = vpop.f32.mrf.mxu3 }
  0xd5   : > { %v611_v10 = vadd.f32 %v1151_v2, %v610_v8  ;;  %v659_v11 = vadd.f32 %v1151_v2, %v658_v9 }
  0xd7   : > { %723 = vst.msk [vmem:[%s1158_s28 + $0x140] sm:$0xff] %vm682_vm1, %v611_v10  ;;  %v517_v12 = vpop.f32.mrf.mxu0 }
  0xd8   : > { %v565_v13 = vpop.f32.mrf.mxu1  ;;  %739 = vst.msk [vmem:[%s1158_s28 + $0x1c0] sm:$0xff] %vm682_vm1, %v659_v11  ;;  %v518_v14 = vadd.f32 %v1151_v2, %v517_v12 }
  0xd9   : > { %v566_v15 = vadd.f32 %v1151_v2, %v565_v13 }
  0xda   : > { %692 = vst.msk [vmem:[%s1158_s28 + $0x48] sm:$0xff] %vm682_vm1, %v518_v14 }
  0xdb   : > { %708 = vst.msk [vmem:[%s1158_s28 + $0xc8] sm:$0xff] %vm682_vm1, %v566_v15 }
  0xdc   : > { %v613_v16 = vpop.f32.mrf.mxu2  ;;  %v661_v17 = vpop.f32.mrf.mxu3 }
  0xdd   : > { %v614_v18 = vadd.f32 %v1151_v2, %v613_v16  ;;  %v662_v19 = vadd.f32 %v1151_v2, %v661_v17 }
  0xdf   : > { %724 = vst.msk [vmem:[%s1158_s28 + $0x148] sm:$0xff] %vm682_vm1, %v614_v18  ;;  %v520_v20 = vpop.f32.mrf.mxu0 }
  0xe0   : > { %v568_v21 = vpop.f32.mrf.mxu1  ;;  %740 = vst.msk [vmem:[%s1158_s28 + $0x1c8] sm:$0xff] %vm682_vm1, %v662_v19  ;;  %v521_v22 = vadd.f32 %v1151_v2, %v520_v20 }
  0xe1   : > { %v569_v23 = vadd.f32 %v1151_v2, %v568_v21 }
  0xe2   : > { %693 = vst.msk [vmem:[%s1158_s28 + $0x50] sm:$0xff] %vm682_vm1, %v521_v22 }
  0xe3   : > { %709 = vst.msk [vmem:[%s1158_s28 + $0xd0] sm:$0xff] %vm682_vm1, %v569_v23 }
  0xe4   : > { %v616_v24 = vpop.f32.mrf.mxu2  ;;  %v664_v25 = vpop.f32.mrf.mxu3 }
  0xe5   : > { %v617_v26 = vadd.f32 %v1151_v2, %v616_v24  ;;  %v665_v27 = vadd.f32 %v1151_v2, %v664_v25 }
  0xe7   : > { %725 = vst.msk [vmem:[%s1158_s28 + $0x150] sm:$0xff] %vm682_vm1, %v617_v26  ;;  %v523_v28 = vpop.f32.mrf.mxu0 }
  0xe8   : > { %v571_v29 = vpop.f32.mrf.mxu1  ;;  %741 = vst.msk [vmem:[%s1158_s28 + $0x1d0] sm:$0xff] %vm682_vm1, %v665_v27  ;;  %v524_v30 = vadd.f32 %v1151_v2, %v523_v28 }
  0xe9   : > { %v572_v31 = vadd.f32 %v1151_v2, %v571_v29 }
  0xea   : > { %694 = vst.msk [vmem:[%s1158_s28 + $0x58] sm:$0xff] %vm682_vm1, %v524_v30 }
  0xeb   : > { %710 = vst.msk [vmem:[%s1158_s28 + $0xd8] sm:$0xff] %vm682_vm1, %v572_v31 }
  0xec   : > { %v619_v32 = vpop.f32.mrf.mxu2  ;;  %v667_v33 = vpop.f32.mrf.mxu3 }
  0xed   : > { %v620_v34 = vadd.f32 %v1151_v2, %v619_v32  ;;  %v668_v35 = vadd.f32 %v1151_v2, %v667_v33 }
  0xef   : > { %726 = vst.msk [vmem:[%s1158_s28 + $0x158] sm:$0xff] %vm682_vm1, %v620_v34  ;;  %v526_v36 = vpop.f32.mrf.mxu0 }
  0xf0   : > { %v574_v37 = vpop.f32.mrf.mxu1  ;;  %742 = vst.msk [vmem:[%s1158_s28 + $0x1d8] sm:$0xff] %vm682_vm1, %v668_v35  ;;  %v527_v38 = vadd.f32 %v1151_v2, %v526_v36 }
  0xf1   : > { %v575_v39 = vadd.f32 %v1151_v2, %v574_v37 }
  0xf2   : > { %695 = vst.msk [vmem:[%s1158_s28 + $0x60] sm:$0xff] %vm682_vm1, %v527_v38 }
  0xf3   : > { %711 = vst.msk [vmem:[%s1158_s28 + $0xe0] sm:$0xff] %vm682_vm1, %v575_v39 }
  0xf4   : > { %v622_v40 = vpop.f32.mrf.mxu2  ;;  %v670_v41 = vpop.f32.mrf.mxu3 }
  0xf5   : > { %v623_v42 = vadd.f32 %v1151_v2, %v622_v40  ;;  %v671_v43 = vadd.f32 %v1151_v2, %v670_v41 }
  0xf7   : > { %727 = vst.msk [vmem:[%s1158_s28 + $0x160] sm:$0xff] %vm682_vm1, %v623_v42  ;;  %v529_v44 = vpop.f32.mrf.mxu0 }
  0xf8   : > { %v577_v45 = vpop.f32.mrf.mxu1  ;;  %743 = vst.msk [vmem:[%s1158_s28 + $0x1e0] sm:$0xff] %vm682_vm1, %v671_v43  ;;  %v530_v46 = vadd.f32 %v1151_v2, %v529_v44 }
  0xf9   : > { %v578_v47 = vadd.f32 %v1151_v2, %v577_v45 }
  0xfa   : > { %696 = vst.msk [vmem:[%s1158_s28 + $0x68] sm:$0xff] %vm682_vm1, %v530_v46 }
  0xfb   : > { %712 = vst.msk [vmem:[%s1158_s28 + $0xe8] sm:$0xff] %vm682_vm1, %v578_v47 }
  0xfc   : > { %v625_v48 = vpop.f32.mrf.mxu2  ;;  %v673_v49 = vpop.f32.mrf.mxu3 }
  0xfd   : > { %v626_v50 = vadd.f32 %v1151_v2, %v625_v48  ;;  %v674_v51 = vadd.f32 %v1151_v2, %v673_v49 }
  0xff   : > { %728 = vst.msk [vmem:[%s1158_s28 + $0x168] sm:$0xff] %vm682_vm1, %v626_v50  ;;  %v532_v52 = vpop.f32.mrf.mxu0 }
 0x100   : > { %v580_v53 = vpop.f32.mrf.mxu1  ;;  %744 = vst.msk [vmem:[%s1158_s28 + $0x1e8] sm:$0xff] %vm682_vm1, %v674_v51  ;;  %v533_v54 = vadd.f32 %v1151_v2, %v532_v52 }
 0x101   : > { %v581_v55 = vadd.f32 %v1151_v2, %v580_v53 }
 0x102   : > { %697 = vst.msk [vmem:[%s1158_s28 + $0x70] sm:$0xff] %vm682_vm1, %v533_v54 }
 0x103   : > { %713 = vst.msk [vmem:[%s1158_s28 + $0xf0] sm:$0xff] %vm682_vm1, %v581_v55 }
 0x104   : > { %v628_v56 = vpop.f32.mrf.mxu2  ;;  %v676_v57 = vpop.f32.mrf.mxu3 }
 0x105   : > { %v629_v58 = vadd.f32 %v1151_v2, %v628_v56  ;;  %v677_v59 = vadd.f32 %v1151_v2, %v676_v57 }
 0x107   : > { %729 = vst.msk [vmem:[%s1158_s28 + $0x170] sm:$0xff] %vm682_vm1, %v629_v58  ;;  %v535_v60 = vpop.f32.mrf.mxu0 }
 0x108   : > { %v583_v61 = vpop.f32.mrf.mxu1  ;;  %745 = vst.msk [vmem:[%s1158_s28 + $0x1f0] sm:$0xff] %vm682_vm1, %v677_v59  ;;  %v536_v62 = vadd.f32 %v1151_v2, %v535_v60 }
 0x109   : > { %v584_v63 = vadd.f32 %v1151_v2, %v583_v61 }
 0x10a   : > { %698 = vst.msk [vmem:[%s1158_s28 + $0x78] sm:$0xff] %vm682_vm1, %v536_v62 }
 0x10b   : > { %714 = vst.msk [vmem:[%s1158_s28 + $0xf8] sm:$0xff] %vm682_vm1, %v584_v63 }
 0x10c   : > { %v631_v0 = vpop.f32.mrf.mxu2  ;;  %v679_v1 = vpop.f32.mrf.mxu3 }
 0x10d   : > { %v632_v3 = vadd.f32 %v1151_v2, %v631_v0  ;;  %v680_v4 = vadd.f32 %v1151_v2, %v679_v1 }
 0x10f   : > { %730 = vst.msk [vmem:[%s1158_s28 + $0x178] sm:$0xff] %vm682_vm1, %v632_v3 }
 0x110   : > { %746 = vst.msk [vmem:[%s1158_s28 + $0x1f8] sm:$0xff] %vm682_vm1, %v680_v4 }
 0x111 PF: > { %s13_s14 = sadd.s32 1, %s964_s14   ;;  %s1365_s12 = smov %s960_s13 }
 0x112   : > { %p10_p5 = scmp.ge.s32.totalorder %s13_s14, 4   ;;  %s1366_s13 = smov %s1368_s15 }
 0x114   :  { %12 = sbr.rel (!%p10_p5) target bundleno = 2 (0x2), region = 62 }

</bundles_post_ra>
